<compile_context>
chip_gen: v7x
topology: tpu7x:2x2x1
jax: 0.10.0
libtpu: 0.0.40
codegen_flags: <defaults>
</compile_context>

<pallas_src>
import functools

import numpy as np
import jax
import jax.numpy as jnp
from jax import lax
from jax.experimental import pallas as pl
from jax.experimental.pallas import tpu as pltpu


# --------------------------------- kernel ----------------------------------

def _nb1d_kernel(x_ref, halo_ref, w_ref, b_ref, o_ref,
                 x_scr, y1_scr, y2_scr, y3_scr, *, W, T):
    """One H-tile (T image rows) of the non_bottleneck_1d forward.

    x_ref   : (1, T*W, C) f32    tile's own rows (image rows [h0, h0+T))
    halo_ref: (1, 1, 4W, C) f32  image rows h0-2, h0-1, h0+T, h0+T+1 (zeros at edges)
    w_ref   : (4, 3, C, C) compute dtype  [conv][tap -1/0/+1][cin][cout]
    b_ref   : (4, 1, C) f32               bias (BN scale/shift folded into convs 1, 3)
    o_ref   : (1, T*W, C) f32
    scratch (compute dtype): x_scr (T+4)W, y1_scr (T+2)W+2, y2_scr (T+2)W, y3_scr TW+2
    """
    C = x_ref.shape[-1]
    R_out = T * W
    R_mid = (T + 2) * W
    cdt = x_scr.dtype

    # Assemble the halo'd input tile in compute dtype. This single copy doubles
    # as the f32 -> bf16 cast pass; every later slice is a zero-copy pl.ds view.
    halo = halo_ref[0, 0].astype(cdt)                          # (4W, C)
    x_scr[pl.ds(0, 2 * W), :] = halo[: 2 * W]
    x_scr[pl.ds(2 * W, R_out), :] = x_ref[0].astype(cdt)
    x_scr[pl.ds(2 * W + R_out, 2 * W), :] = halo[2 * W:]

    # W-boundary masks for the two 1x3 convs: computed ONCE per tile, applied
    # to the +-1 tap outputs (one select per tap).
    wpos = lax.broadcasted_iota(jnp.int32, (R_mid, 1), 0) % W
    m_lo = wpos >= 1            # row has a left  (w-1) neighbour
    m_hi = wpos <= W - 2        # row has a right (w+1) neighbour

    def conv3(src, rows, step, idx, mask_lo=None, mask_hi=None):
        """Factorized 3-tap conv = 3 accumulating (rows,C)x(C,C) MXU matmuls.

        Every scratch is laid out so its row 0 sits exactly one `step` before
        the first output row, hence taps read offsets 0 / step / 2*step.
        """
        lo = jnp.dot(src[pl.ds(0, rows), :], w_ref[idx, 0],
                     preferred_element_type=jnp.float32)
        if mask_lo is not None:
            lo = jnp.where(mask_lo, lo, 0.0)
        acc = lo + jnp.dot(src[pl.ds(step, rows), :], w_ref[idx, 1],
                           preferred_element_type=jnp.float32)
        hi = jnp.dot(src[pl.ds(2 * step, rows), :], w_ref[idx, 2],
                     preferred_element_type=jnp.float32)
        if mask_hi is not None:
            hi = jnp.where(mask_hi, hi, 0.0)
        return acc + hi + b_ref[idx]

    # conv3x1_1 + relu  (image rows [h0-1, h0+T+1): recomputed halo)
    y1 = jnp.maximum(conv3(x_scr, R_mid, W, 0), 0.0)
    y1_scr[pl.ds(0, 1), :] = jnp.zeros((1, C), cdt)
    y1_scr[pl.ds(R_mid + 1, 1), :] = jnp.zeros((1, C), cdt)
    y1_scr[pl.ds(1, R_mid), :] = y1.astype(cdt)

    # conv1x3_1 + folded bn1 + relu
    y2 = jnp.maximum(conv3(y1_scr, R_mid, 1, 1, m_lo, m_hi), 0.0)
    y2_scr[pl.ds(0, R_mid), :] = y2.astype(cdt)

    # conv3x1_2's zero padding lives at the TRUE image top/bottom rows: force
    # the intermediate to zero there (first / last H tile only).
    @pl.when(pl.program_id(1) == 0)
    def _():
        y2_scr[pl.ds(0, W), :] = jnp.zeros((W, C), cdt)

    @pl.when(pl.program_id(1) == pl.num_programs(1) - 1)
    def _():
        y2_scr[pl.ds(R_mid - W, W), :] = jnp.zeros((W, C), cdt)

    # conv3x1_2 + relu  (exactly the T*W output rows)
    y3 = jnp.maximum(conv3(y2_scr, R_out, W, 2), 0.0)
    y3_scr[pl.ds(0, 1), :] = jnp.zeros((1, C), cdt)
    y3_scr[pl.ds(R_out + 1, 1), :] = jnp.zeros((1, C), cdt)
    y3_scr[pl.ds(1, R_out), :] = y3.astype(cdt)

    # conv1x3_2 + folded bn2; dropout p == 0 -> identity; f32 residual + relu.
    y4 = conv3(y3_scr, R_out, 1, 3, m_lo[:R_out], m_hi[:R_out])
    o_ref[0] = jnp.maximum(y4 + x_ref[0].astype(jnp.float32), 0.0
                           ).astype(o_ref.dtype)


# ------------------------------ host wrapper --------------------------------

def _vmem_budget(C, compute_bytes):
    """Per-generation (vmem_limit_bytes, flattened-row budget per H tile)."""
    try:
        vmem_cap = pltpu.get_tpu_info().vmem_capacity_bytes   # 64 MiB v7x, 128 MiB v5e/v6e
    except Exception:
        vmem_cap = 64 << 20                                    # v7x-safe default
    vmem_limit = max(32 << 20, min(int(vmem_cap * 3 // 4), 96 << 20))
    # Rough per-flattened-row live set: 4 compute-dtype scratch slabs + f32
    # double-buffered in/out pipeline blocks + ~1 transient f32 value.
    bytes_per_row = C * (4 * compute_bytes + 24)
    rows = max(64, (vmem_limit // 2) // bytes_per_row)
    return vmem_limit, int(rows)


def _pick_h_tile(H, W, row_budget):
    """Largest divisor T>=2 of H with T*W <= row_budget and (T*W) % 8 == 0."""
    cands = [t for t in range(2, H + 1) if H % t == 0 and (t * W) % 8 == 0]
    fits = [t for t in cands if t * W <= row_budget]
    if fits:
        return max(fits)
    return min(cands) if cands else H


def non_bottleneck_1d_pallas(x_nhwc, w_packed, b_packed, *, h_tile=None,
                             compute_dtype=jnp.bfloat16):
    """ERFNet non_bottleneck_1d forward (eval-mode BN, dropout p=0).

    x_nhwc  : (N, H, W, C) float32, channels-last end-to-end (no NCHW transposes here).
    w_packed: (4, 3, C, C) compute_dtype, from pack_params().
    b_packed: (4, 1, C) float32,          from pack_params().
    """
    N, H, W, C = x_nhwc.shape
    assert H >= 2, "H >= 2 required"
    cbytes = jnp.dtype(compute_dtype).itemsize
    vmem_limit, row_budget = _vmem_budget(C, cbytes)
    T = h_tile if h_tile is not None else _pick_h_tile(H, W, row_budget)
    assert H % T == 0 and T >= 2, f"h_tile={T} must divide H={H} and be >= 2"
    nht = H // T
    r_out, r_mid, r_in = T * W, (T + 2) * W, (T + 4) * W

    # Tiny halo side-input (image rows h0-2, h0-1, h0+T, h0+T+1 per tile; zeros
    # at the image edges) so every operand stays a plain Blocked BlockSpec and
    # the whole pipeline remains auto double-buffered.
    xp = jnp.pad(x_nhwc, ((0, 0), (2, 2), (0, 0), (0, 0)))
    top = xp[:, :H].reshape(N, nht, T, W, C)[:, :, :2]
    bot = xp[:, 4:].reshape(N, nht, T, W, C)[:, :, T - 2:]
    halo = jnp.concatenate([top, bot], axis=2).reshape(N, nht, 4 * W, C)

    x_flat = x_nhwc.reshape(N, H * W, C)   # metadata-only reshape (contiguous)

    out_flat = pl.pallas_call(
        functools.partial(_nb1d_kernel, W=W, T=T),
        out_shape=jax.ShapeDtypeStruct((N, H * W, C), x_nhwc.dtype),
        grid=(N, nht),
        in_specs=[
            pl.BlockSpec((1, r_out, C), lambda n, h: (n, h, 0)),
            pl.BlockSpec((1, 1, 4 * W, C), lambda n, h: (n, h, 0, 0)),
            pl.BlockSpec((4, 3, C, C), lambda n, h: (0, 0, 0, 0)),
            pl.BlockSpec((4, 1, C), lambda n, h: (0, 0, 0)),
        ],
        out_specs=pl.BlockSpec((1, r_out, C), lambda n, h: (n, h, 0)),
        scratch_shapes=[
            pltpu.VMEM((r_in, C), compute_dtype),        # halo'd input tile
            pltpu.VMEM((r_mid + 2, C), compute_dtype),   # y1 (+-1 row pad)
            pltpu.VMEM((r_mid, C), compute_dtype),       # y2
            pltpu.VMEM((r_out + 2, C), compute_dtype),   # y3 (+-1 row pad)
        ],
        compiler_params=pltpu.CompilerParams(
            dimension_semantics=("parallel", "parallel"),
            vmem_limit_bytes=vmem_limit),
    )(x_flat, halo, w_packed, b_packed)

    return out_flat.reshape(N, H, W, C)


# ----------------------- host-side parameter packing ------------------------

def _taps(w_oihw):
    """PyTorch (Cout,Cin,3,1)/(Cout,Cin,1,3) -> (3, Cin, Cout); tap k <-> offset k-1."""
    cout, cin = w_oihw.shape[:2]
    return jnp.transpose(w_oihw.reshape(cout, cin, 3), (2, 1, 0))


def pack_params(w3x1_1, b3x1_1, w1x3_1, b1x3_1, s1, t1,
                w3x1_2, b3x1_2, w1x3_2, b1x3_2, s2, t2,
                compute_dtype=jnp.bfloat16):
    """Fold eval-mode BN (scale s, shift t) into the 1x3 convs; pack for the kernel."""
    wp = jnp.stack([_taps(w3x1_1),
                    _taps(w1x3_1) * s1[None, None, :],
                    _taps(w3x1_2),
                    _taps(w1x3_2) * s2[None, None, :]], axis=0)
    bp = jnp.stack([b3x1_1,
                    b1x3_1 * s1 + t1,
                    b3x1_2,
                    b1x3_2 * s2 + t2], axis=0)
    C = wp.shape[-1]
    return wp.astype(compute_dtype), bp.reshape(4, 1, C).astype(jnp.float32)


# --------------------------- reference (pure JAX) ----------------------------

def _torch_conv(x, w, b, pad):
    y = lax.conv_general_dilated(
        x, w, window_strides=(1, 1), padding=pad,
        dimension_numbers=("NCHW", "OIHW", "NCHW"))
    return y + b[None, :, None, None]


def _ref_forward(x, w1, b1, w2, b2, s1, t1, w3, b3, w4, b4, s2, t2):
    pad_h = ((1, 1), (0, 0))
    pad_w = ((0, 0), (1, 1))
    y = jnp.maximum(_torch_conv(x, w1, b1, pad_h), 0.0)
    y = _torch_conv(y, w2, b2, pad_w)
    y = y * s1[None, :, None, None] + t1[None, :, None, None]
    y = jnp.maximum(y, 0.0)
    y = jnp.maximum(_torch_conv(y, w3, b3, pad_h), 0.0)
    y = _torch_conv(y, w4, b4, pad_w)
    y = y * s2[None, :, None, None] + t2[None, :, None, None]
    return jnp.maximum(y + x, 0.0)


# ---------------------------------- main -------------------------------------

if __name__ == "__main__":
    key = jax.random.PRNGKey(0)
    ks = jax.random.split(key, 10)

    N, C, H, W = 2, 4, 16, 16
    eps = 1e-3  # matches nn.BatchNorm2d(channel, eps=0.001)

    # Conv parameters (deterministic synthetic init, PyTorch OIHW layout).
    w3x1_1 = 0.2 * jax.random.normal(ks[0], (C, C, 3, 1), jnp.float32)
    b3x1_1 = 0.1 * jax.random.normal(ks[1], (C,), jnp.float32)
    w1x3_1 = 0.2 * jax.random.normal(ks[2], (C, C, 1, 3), jnp.float32)
    b1x3_1 = 0.1 * jax.random.normal(ks[3], (C,), jnp.float32)
    w3x1_2 = 0.2 * jax.random.normal(ks[4], (C, C, 3, 1), jnp.float32)
    b3x1_2 = 0.1 * jax.random.normal(ks[5], (C,), jnp.float32)
    w1x3_2 = 0.2 * jax.random.normal(ks[6], (C, C, 1, 3), jnp.float32)
    b1x3_2 = 0.1 * jax.random.normal(ks[7], (C,), jnp.float32)

    # BatchNorm (eval mode) parameters, folded to per-channel scale/shift.
    ar = jnp.arange(C, dtype=jnp.float32)
    g1, be1 = 1.0 + 0.10 * ar, 0.05 * ar - 0.02
    m1, v1 = 0.02 * ar - 0.03, 1.0 + 0.05 * ar
    g2, be2 = 1.0 - 0.05 * ar, 0.03 * ar + 0.01
    m2, v2 = 0.01 * ar + 0.02, 1.0 + 0.10 * ar
    s1 = g1 / jnp.sqrt(v1 + eps); t1 = be1 - m1 * s1
    s2 = g2 / jnp.sqrt(v2 + eps); t2 = be2 - m2 * s2

    x_nchw = jax.random.normal(ks[8], (N, C, H, W), jnp.float32)
    ref = _ref_forward(x_nchw, w3x1_1, b3x1_1, w1x3_1, b1x3_1, s1, t1,
                       w3x1_2, b3x1_2, w1x3_2, b1x3_2, s2, t2)

    # The kernel keeps activations channels-last end-to-end; convert once here
    # only because the PyTorch-layout reference above is NCHW.
    x_nhwc = jnp.transpose(x_nchw, (0, 2, 3, 1))

    # 1) f32 MXU operands, 2 H tiles: tight validation of tiling/halo/indexing.
    wp32, bp32 = pack_params(w3x1_1, b3x1_1, w1x3_1, b1x3_1, s1, t1,
                             w3x1_2, b3x1_2, w1x3_2, b1x3_2, s2, t2,
                             compute_dtype=jnp.float32)
    out32 = non_bottleneck_1d_pallas(x_nhwc, wp32, bp32, h_tile=H // 2,
                                     compute_dtype=jnp.float32)
    out32 = jax.block_until_ready(out32)
    np.testing.assert_allclose(np.asarray(jnp.transpose(out32, (0, 3, 1, 2))),
                               np.asarray(ref), rtol=2e-4, atol=2e-4)

    # 2) bf16 MXU operands (production setting), 4 H tiles: looser tolerance
    #    since activations/weights are rounded to bf16 before each matmul.
    wp16, bp16 = pack_params(w3x1_1, b3x1_1, w1x3_1, b1x3_1, s1, t1,
                             w3x1_2, b3x1_2, w1x3_2, b1x3_2, s2, t2,
                             compute_dtype=jnp.bfloat16)
    out16 = non_bottleneck_1d_pallas(x_nhwc, wp16, bp16, h_tile=H // 4,
                                     compute_dtype=jnp.bfloat16)
    out16 = jax.block_until_ready(out16)
    np.testing.assert_allclose(np.asarray(jnp.transpose(out16, (0, 3, 1, 2))),
                               np.asarray(ref), rtol=1e-1, atol=1e-1)

    print("KERNEL_OK")
</pallas_src>

<mosaic_0001>
module attributes {stable_mosaic.version = 11 : i64} {
  func.func @_nb1d_kernel(%arg0: i32, %arg1: i32, %arg2: memref<1x128x4xf32, #tpu.memory_space<vmem>>, %arg3: memref<1x1x64x4xf32, #tpu.memory_space<vmem>>, %arg4: memref<4x3x4x4xf32, #tpu.memory_space<vmem>>, %arg5: memref<4x1x4xf32, #tpu.memory_space<vmem>>, %arg6: memref<1x128x4xf32, #tpu.memory_space<vmem>>, %arg7: memref<192x4xf32, #tpu.memory_space<vmem>>, %arg8: memref<162x4xf32, #tpu.memory_space<vmem>>, %arg9: memref<160x4xf32, #tpu.memory_space<vmem>>, %arg10: memref<130x4xf32, #tpu.memory_space<vmem>>) attributes {dimension_semantics = [#tpu.dimension_semantics<parallel>, #tpu.dimension_semantics<parallel>], iteration_bounds = array<i64: 2, 2>, scalar_prefetch = 0 : i64, scratch_operands = 4 : i64, tpu.core_type = #tpu.core_type<tc>, window_params = [{transform_indices = @transform_0, window_bounds = array<i64: 1, 128, 4>}, {transform_indices = @transform_1, window_bounds = array<i64: 1, 1, 64, 4>}, {pipeline_mode = #tpu.pipeline_mode<synchronous>, transform_indices = @transform_2, window_bounds = array<i64: 4, 3, 4, 4>}, {pipeline_mode = #tpu.pipeline_mode<synchronous>, transform_indices = @transform_3, window_bounds = array<i64: 4, 1, 4>}, {transform_indices = @transform_4, window_bounds = array<i64: 1, 128, 4>}]} {
    %c0 = arith.constant 0 : index
    %c0_0 = arith.constant 0 : index
    %c0_1 = arith.constant 0 : index
    %c0_2 = arith.constant 0 : index
    %0 = vector.load %arg3[%c0, %c0_0, %c0_1, %c0_2] : memref<1x1x64x4xf32, #tpu.memory_space<vmem>>, vector<1x1x64x4xf32>
    %1 = vector.shape_cast %0 : vector<1x1x64x4xf32> to vector<64x4xf32>
    %2 = vector.extract_strided_slice %1 {offsets = [0, 0], sizes = [32, 4], strides = [1, 1]} : vector<64x4xf32> to vector<32x4xf32>
    %c0_3 = arith.constant 0 : index
    %c0_4 = arith.constant 0 : index
    %3 = vector.load %arg7[%c0_3, %c0_4] : memref<192x4xf32, #tpu.memory_space<vmem>>, vector<32x4xf32>
    tpu.vector_store %arg7[%c0_3, %c0_4], %2 {strides = array<i32>} : memref<192x4xf32, #tpu.memory_space<vmem>>, vector<32x4xf32>,
    %c0_5 = arith.constant 0 : index
    %c0_6 = arith.constant 0 : index
    %c0_7 = arith.constant 0 : index
    %4 = vector.load %arg2[%c0_5, %c0_6, %c0_7] : memref<1x128x4xf32, #tpu.memory_space<vmem>>, vector<1x128x4xf32>
    %5 = vector.shape_cast %4 : vector<1x128x4xf32> to vector<128x4xf32>
    %c32 = arith.constant 32 : index
    %c0_8 = arith.constant 0 : index
    %6 = vector.load %arg7[%c32, %c0_8] : memref<192x4xf32, #tpu.memory_space<vmem>>, vector<128x4xf32>
    tpu.vector_store %arg7[%c32, %c0_8], %5 {strides = array<i32>} : memref<192x4xf32, #tpu.memory_space<vmem>>, vector<128x4xf32>,
    %7 = vector.extract_strided_slice %1 {offsets = [32, 0], sizes = [32, 4], strides = [1, 1]} : vector<64x4xf32> to vector<32x4xf32>
    %c160 = arith.constant 160 : index
    %c0_9 = arith.constant 0 : index
    %8 = vector.load %arg7[%c160, %c0_9] : memref<192x4xf32, #tpu.memory_space<vmem>>, vector<32x4xf32>
    tpu.vector_store %arg7[%c160, %c0_9], %7 {strides = array<i32>} : memref<192x4xf32, #tpu.memory_space<vmem>>, vector<32x4xf32>,
    %9 = tpu.iota {dimensions = array<i32: 0>} : vector<160x1xi32>
    %c16_i32 = arith.constant 16 : i32
    %c0_i32 = arith.constant 0 : i32
    %10 = arith.cmpi eq, %c16_i32, %c0_i32 : i32
    %c1_i32 = arith.constant 1 : i32
    %11 = arith.select %10, %c1_i32, %c16_i32 : i32
    %12 = vector.broadcast %11 : i32 to vector<160x1xi32>
    %13 = arith.remsi %9, %12 : vector<160x1xi32>
    %c0_i32_10 = arith.constant 0 : i32
    %14 = vector.broadcast %c0_i32_10 : i32 to vector<160x1xi32>
    %15 = arith.cmpi ne, %13, %14 : vector<160x1xi32>
    %c0_i32_11 = arith.constant 0 : i32
    %16 = vector.broadcast %c0_i32_11 : i32 to vector<160x1xi32>
    %17 = arith.cmpi slt, %13, %16 : vector<160x1xi32>
    %c0_i32_12 = arith.constant 0 : i32
    %18 = arith.cmpi slt, %11, %c0_i32_12 : i32
    %19 = vector.broadcast %18 : i1 to vector<160x1xi1>
    %20 = vector.broadcast %19 : vector<160x1xi1> to vector<160x1xi1>
    %21 = arith.xori %17, %20 : vector<160x1xi1>
    %22 = arith.andi %21, %15 : vector<160x1xi1>
    %23 = vector.broadcast %11 : i32 to vector<160x1xi32>
    %24 = arith.addi %13, %23 : vector<160x1xi32>
    %25 = arith.select %22, %24, %13 : vector<160x1xi1>, vector<160x1xi32>
    %c1_i32_13 = arith.constant 1 : i32
    %26 = vector.broadcast %c1_i32_13 : i32 to vector<160x1xi32>
    %27 = arith.cmpi sge, %25, %26 : vector<160x1xi32>
    %c14_i32 = arith.constant 14 : i32
    %28 = vector.broadcast %c14_i32 : i32 to vector<160x1xi32>
    %29 = arith.cmpi sle, %25, %28 : vector<160x1xi32>
    %c0_14 = arith.constant 0 : index
    %c0_15 = arith.constant 0 : index
    %30 = vector.load %arg7[%c0_14, %c0_15] : memref<192x4xf32, #tpu.memory_space<vmem>>, vector<160x4xf32>
    %c0_16 = arith.constant 0 : index
    %c0_17 = arith.constant 0 : index
    %c0_18 = arith.constant 0 : index
    %c0_19 = arith.constant 0 : index
    %31 = vector.load %arg4[%c0_16, %c0_17, %c0_18, %c0_19] : memref<4x3x4x4xf32, #tpu.memory_space<vmem>>, vector<1x1x4x4xf32>
    %32 = vector.shape_cast %31 : vector<1x1x4x4xf32> to vector<4x4xf32>
    %cst = arith.constant dense<0.000000e+00> : vector<160x4xf32>
    %33 = tpu.matmul %30, %32, %cst {dimension_numbers = #tpu.dot_dimension_numbers<[1], [0], [0], [1], [0, 0, 1, 1], [], []>} : vector<160x4xf32>, vector<4x4xf32>, vector<160x4xf32> -> vector<160x4xf32>
    %c16 = arith.constant 16 : index
    %c0_20 = arith.constant 0 : index
    %34 = vector.load %arg7[%c16, %c0_20] : memref<192x4xf32, #tpu.memory_space<vmem>>, vector<160x4xf32>
    %c0_21 = arith.constant 0 : index
    %c1 = arith.constant 1 : index
    %c0_22 = arith.constant 0 : index
    %c0_23 = arith.constant 0 : index
    %35 = vector.load %arg4[%c0_21, %c1, %c0_22, %c0_23] : memref<4x3x4x4xf32, #tpu.memory_space<vmem>>, vector<1x1x4x4xf32>
    %36 = vector.shape_cast %35 : vector<1x1x4x4xf32> to vector<4x4xf32>
    %cst_24 = arith.constant dense<0.000000e+00> : vector<160x4xf32>
    %37 = tpu.matmul %34, %36, %cst_24 {dimension_numbers = #tpu.dot_dimension_numbers<[1], [0], [0], [1], [0, 0, 1, 1], [], []>} : vector<160x4xf32>, vector<4x4xf32>, vector<160x4xf32> -> vector<160x4xf32>
    %38 = arith.addf %33, %37 : vector<160x4xf32>
    %c32_25 = arith.constant 32 : index
    %c0_26 = arith.constant 0 : index
    %39 = vector.load %arg7[%c32_25, %c0_26] : memref<192x4xf32, #tpu.memory_space<vmem>>, vector<160x4xf32>
    %c0_27 = arith.constant 0 : index
    %c2 = arith.constant 2 : index
    %c0_28 = arith.constant 0 : index
    %c0_29 = arith.constant 0 : index
    %40 = vector.load %arg4[%c0_27, %c2, %c0_28, %c0_29] : memref<4x3x4x4xf32, #tpu.memory_space<vmem>>, vector<1x1x4x4xf32>
    %41 = vector.shape_cast %40 : vector<1x1x4x4xf32> to vector<4x4xf32>
    %cst_30 = arith.constant dense<0.000000e+00> : vector<160x4xf32>
    %42 = tpu.matmul %39, %41, %cst_30 {dimension_numbers = #tpu.dot_dimension_numbers<[1], [0], [0], [1], [0, 0, 1, 1], [], []>} : vector<160x4xf32>, vector<4x4xf32>, vector<160x4xf32> -> vector<160x4xf32>
    %43 = arith.addf %38, %42 : vector<160x4xf32>
    %c0_31 = arith.constant 0 : index
    %c0_32 = arith.constant 0 : index
    %c0_33 = arith.constant 0 : index
    %44 = vector.load %arg5[%c0_31, %c0_32, %c0_33] : memref<4x1x4xf32, #tpu.memory_space<vmem>>, vector<1x1x4xf32>
    %45 = vector.shape_cast %44 : vector<1x1x4xf32> to vector<1x4xf32>
    %46 = vector.broadcast %45 : vector<1x4xf32> to vector<160x4xf32>
    %47 = arith.addf %43, %46 : vector<160x4xf32>
    %cst_34 = arith.constant 0.000000e+00 : f32
    %48 = vector.broadcast %cst_34 : f32 to vector<160x4xf32>
    %49 = arith.maximumf %47, %48 : vector<160x4xf32>
    %cst_35 = arith.constant 0.000000e+00 : f32
    %50 = vector.broadcast %cst_35 : f32 to vector<1x4xf32>
    %c0_36 = arith.constant 0 : index
    %c0_37 = arith.constant 0 : index
    %51 = vector.load %arg8[%c0_36, %c0_37] : memref<162x4xf32, #tpu.memory_space<vmem>>, vector<1x4xf32>
    tpu.vector_store %arg8[%c0_36, %c0_37], %50 {strides = array<i32>} : memref<162x4xf32, #tpu.memory_space<vmem>>, vector<1x4xf32>,
    %cst_38 = arith.constant 0.000000e+00 : f32
    %52 = vector.broadcast %cst_38 : f32 to vector<1x4xf32>
    %c161 = arith.constant 161 : index
    %c0_39 = arith.constant 0 : index
    %53 = vector.load %arg8[%c161, %c0_39] : memref<162x4xf32, #tpu.memory_space<vmem>>, vector<1x4xf32>
    tpu.vector_store %arg8[%c161, %c0_39], %52 {strides = array<i32>} : memref<162x4xf32, #tpu.memory_space<vmem>>, vector<1x4xf32>,
    %c1_40 = arith.constant 1 : index
    %c0_41 = arith.constant 0 : index
    %54 = vector.load %arg8[%c1_40, %c0_41] : memref<162x4xf32, #tpu.memory_space<vmem>>, vector<160x4xf32>
    tpu.vector_store %arg8[%c1_40, %c0_41], %49 {strides = array<i32>} : memref<162x4xf32, #tpu.memory_space<vmem>>, vector<160x4xf32>,
    %c0_42 = arith.constant 0 : index
    %c0_43 = arith.constant 0 : index
    %55 = vector.load %arg8[%c0_42, %c0_43] : memref<162x4xf32, #tpu.memory_space<vmem>>, vector<160x4xf32>
    %c1_44 = arith.constant 1 : index
    %c0_45 = arith.constant 0 : index
    %c0_46 = arith.constant 0 : index
    %c0_47 = arith.constant 0 : index
    %56 = vector.load %arg4[%c1_44, %c0_45, %c0_46, %c0_47] : memref<4x3x4x4xf32, #tpu.memory_space<vmem>>, vector<1x1x4x4xf32>
    %57 = vector.shape_cast %56 : vector<1x1x4x4xf32> to vector<4x4xf32>
    %cst_48 = arith.constant dense<0.000000e+00> : vector<160x4xf32>
    %58 = tpu.matmul %55, %57, %cst_48 {dimension_numbers = #tpu.dot_dimension_numbers<[1], [0], [0], [1], [0, 0, 1, 1], [], []>} : vector<160x4xf32>, vector<4x4xf32>, vector<160x4xf32> -> vector<160x4xf32>
    %cst_49 = arith.constant 0.000000e+00 : f32
    %59 = vector.shape_cast %27 : vector<160x1xi1> to vector<160x1xi1>
    %60 = vector.broadcast %59 : vector<160x1xi1> to vector<160x4xi1>
    %61 = vector.broadcast %cst_49 : f32 to vector<160x4xf32>
    %62 = arith.select %60, %58, %61 : vector<160x4xi1>, vector<160x4xf32>
    %c1_50 = arith.constant 1 : index
    %c0_51 = arith.constant 0 : index
    %63 = vector.load %arg8[%c1_50, %c0_51] : memref<162x4xf32, #tpu.memory_space<vmem>>, vector<160x4xf32>
    %c1_52 = arith.constant 1 : index
    %c1_53 = arith.constant 1 : index
    %c0_54 = arith.constant 0 : index
    %c0_55 = arith.constant 0 : index
    %64 = vector.load %arg4[%c1_52, %c1_53, %c0_54, %c0_55] : memref<4x3x4x4xf32, #tpu.memory_space<vmem>>, vector<1x1x4x4xf32>
    %65 = vector.shape_cast %64 : vector<1x1x4x4xf32> to vector<4x4xf32>
    %cst_56 = arith.constant dense<0.000000e+00> : vector<160x4xf32>
    %66 = tpu.matmul %63, %65, %cst_56 {dimension_numbers = #tpu.dot_dimension_numbers<[1], [0], [0], [1], [0, 0, 1, 1], [], []>} : vector<160x4xf32>, vector<4x4xf32>, vector<160x4xf32> -> vector<160x4xf32>
    %67 = arith.addf %62, %66 : vector<160x4xf32>
    %c2_57 = arith.constant 2 : index
    %c0_58 = arith.constant 0 : index
    %68 = vector.load %arg8[%c2_57, %c0_58] : memref<162x4xf32, #tpu.memory_space<vmem>>, vector<160x4xf32>
    %c1_59 = arith.constant 1 : index
    %c2_60 = arith.constant 2 : index
    %c0_61 = arith.constant 0 : index
    %c0_62 = arith.constant 0 : index
    %69 = vector.load %arg4[%c1_59, %c2_60, %c0_61, %c0_62] : memref<4x3x4x4xf32, #tpu.memory_space<vmem>>, vector<1x1x4x4xf32>
    %70 = vector.shape_cast %69 : vector<1x1x4x4xf32> to vector<4x4xf32>
    %cst_63 = arith.constant dense<0.000000e+00> : vector<160x4xf32>
    %71 = tpu.matmul %68, %70, %cst_63 {dimension_numbers = #tpu.dot_dimension_numbers<[1], [0], [0], [1], [0, 0, 1, 1], [], []>} : vector<160x4xf32>, vector<4x4xf32>, vector<160x4xf32> -> vector<160x4xf32>
    %cst_64 = arith.constant 0.000000e+00 : f32
    %72 = vector.shape_cast %29 : vector<160x1xi1> to vector<160x1xi1>
    %73 = vector.broadcast %72 : vector<160x1xi1> to vector<160x4xi1>
    %74 = vector.broadcast %cst_64 : f32 to vector<160x4xf32>
    %75 = arith.select %73, %71, %74 : vector<160x4xi1>, vector<160x4xf32>
    %76 = arith.addf %67, %75 : vector<160x4xf32>
    %c1_65 = arith.constant 1 : index
    %c0_66 = arith.constant 0 : index
    %c0_67 = arith.constant 0 : index
    %77 = vector.load %arg5[%c1_65, %c0_66, %c0_67] : memref<4x1x4xf32, #tpu.memory_space<vmem>>, vector<1x1x4xf32>
    %78 = vector.shape_cast %77 : vector<1x1x4xf32> to vector<1x4xf32>
    %79 = vector.broadcast %78 : vector<1x4xf32> to vector<160x4xf32>
    %80 = arith.addf %76, %79 : vector<160x4xf32>
    %cst_68 = arith.constant 0.000000e+00 : f32
    %81 = vector.broadcast %cst_68 : f32 to vector<160x4xf32>
    %82 = arith.maximumf %80, %81 : vector<160x4xf32>
    %c0_69 = arith.constant 0 : index
    %c0_70 = arith.constant 0 : index
    %83 = vector.load %arg9[%c0_69, %c0_70] : memref<160x4xf32, #tpu.memory_space<vmem>>, vector<160x4xf32>
    tpu.vector_store %arg9[%c0_69, %c0_70], %82 {strides = array<i32>} : memref<160x4xf32, #tpu.memory_space<vmem>>, vector<160x4xf32>,
    %c0_i32_71 = arith.constant 0 : i32
    %84 = arith.cmpi eq, %arg1, %c0_i32_71 : i32
    %85 = arith.extui %84 : i1 to i32
    %c0_i32_72 = arith.constant 0 : i32
    %86 = arith.cmpi ne, %85, %c0_i32_72 : i32
    scf.if %86 {
      %cst_139 = arith.constant 0.000000e+00 : f32
      %151 = vector.broadcast %cst_139 : f32 to vector<16x4xf32>
      %c0_140 = arith.constant 0 : index
      %c0_141 = arith.constant 0 : index
      %152 = vector.load %arg9[%c0_140, %c0_141] : memref<160x4xf32, #tpu.memory_space<vmem>>, vector<16x4xf32>
      tpu.vector_store %arg9[%c0_140, %c0_141], %151 {strides = array<i32>} : memref<160x4xf32, #tpu.memory_space<vmem>>, vector<16x4xf32>,
    } else {
    }
    %c1_i32_73 = arith.constant 1 : i32
    %87 = arith.cmpi eq, %arg1, %c1_i32_73 : i32
    %88 = arith.extui %87 : i1 to i32
    %c0_i32_74 = arith.constant 0 : i32
    %89 = arith.cmpi ne, %88, %c0_i32_74 : i32
    scf.if %89 {
      %cst_139 = arith.constant 0.000000e+00 : f32
      %151 = vector.broadcast %cst_139 : f32 to vector<16x4xf32>
      %c144 = arith.constant 144 : index
      %c0_140 = arith.constant 0 : index
      %152 = vector.load %arg9[%c144, %c0_140] : memref<160x4xf32, #tpu.memory_space<vmem>>, vector<16x4xf32>
      tpu.vector_store %arg9[%c144, %c0_140], %151 {strides = array<i32>} : memref<160x4xf32, #tpu.memory_space<vmem>>, vector<16x4xf32>,
    } else {
    }
    %c0_75 = arith.constant 0 : index
    %c0_76 = arith.constant 0 : index
    %90 = vector.load %arg9[%c0_75, %c0_76] : memref<160x4xf32, #tpu.memory_space<vmem>>, vector<128x4xf32>
    %c2_77 = arith.constant 2 : index
    %c0_78 = arith.constant 0 : index
    %c0_79 = arith.constant 0 : index
    %c0_80 = arith.constant 0 : index
    %91 = vector.load %arg4[%c2_77, %c0_78, %c0_79, %c0_80] : memref<4x3x4x4xf32, #tpu.memory_space<vmem>>, vector<1x1x4x4xf32>
    %92 = vector.shape_cast %91 : vector<1x1x4x4xf32> to vector<4x4xf32>
    %cst_81 = arith.constant dense<0.000000e+00> : vector<128x4xf32>
    %93 = tpu.matmul %90, %92, %cst_81 {dimension_numbers = #tpu.dot_dimension_numbers<[1], [0], [0], [1], [0, 0, 1, 1], [], []>} : vector<128x4xf32>, vector<4x4xf32>, vector<128x4xf32> -> vector<128x4xf32>
    %c16_82 = arith.constant 16 : index
    %c0_83 = arith.constant 0 : index
    %94 = vector.load %arg9[%c16_82, %c0_83] : memref<160x4xf32, #tpu.memory_space<vmem>>, vector<128x4xf32>
    %c2_84 = arith.constant 2 : index
    %c1_85 = arith.constant 1 : index
    %c0_86 = arith.constant 0 : index
    %c0_87 = arith.constant 0 : index
    %95 = vector.load %arg4[%c2_84, %c1_85, %c0_86, %c0_87] : memref<4x3x4x4xf32, #tpu.memory_space<vmem>>, vector<1x1x4x4xf32>
    %96 = vector.shape_cast %95 : vector<1x1x4x4xf32> to vector<4x4xf32>
    %cst_88 = arith.constant dense<0.000000e+00> : vector<128x4xf32>
    %97 = tpu.matmul %94, %96, %cst_88 {dimension_numbers = #tpu.dot_dimension_numbers<[1], [0], [0], [1], [0, 0, 1, 1], [], []>} : vector<128x4xf32>, vector<4x4xf32>, vector<128x4xf32> -> vector<128x4xf32>
    %98 = arith.addf %93, %97 : vector<128x4xf32>
    %c32_89 = arith.constant 32 : index
    %c0_90 = arith.constant 0 : index
    %99 = vector.load %arg9[%c32_89, %c0_90] : memref<160x4xf32, #tpu.memory_space<vmem>>, vector<128x4xf32>
    %c2_91 = arith.constant 2 : index
    %c2_92 = arith.constant 2 : index
    %c0_93 = arith.constant 0 : index
    %c0_94 = arith.constant 0 : index
    %100 = vector.load %arg4[%c2_91, %c2_92, %c0_93, %c0_94] : memref<4x3x4x4xf32, #tpu.memory_space<vmem>>, vector<1x1x4x4xf32>
    %101 = vector.shape_cast %100 : vector<1x1x4x4xf32> to vector<4x4xf32>
    %cst_95 = arith.constant dense<0.000000e+00> : vector<128x4xf32>
    %102 = tpu.matmul %99, %101, %cst_95 {dimension_numbers = #tpu.dot_dimension_numbers<[1], [0], [0], [1], [0, 0, 1, 1], [], []>} : vector<128x4xf32>, vector<4x4xf32>, vector<128x4xf32> -> vector<128x4xf32>
    %103 = arith.addf %98, %102 : vector<128x4xf32>
    %c2_96 = arith.constant 2 : index
    %c0_97 = arith.constant 0 : index
    %c0_98 = arith.constant 0 : index
    %104 = vector.load %arg5[%c2_96, %c0_97, %c0_98] : memref<4x1x4xf32, #tpu.memory_space<vmem>>, vector<1x1x4xf32>
    %105 = vector.shape_cast %104 : vector<1x1x4xf32> to vector<1x4xf32>
    %106 = vector.broadcast %105 : vector<1x4xf32> to vector<128x4xf32>
    %107 = arith.addf %103, %106 : vector<128x4xf32>
    %cst_99 = arith.constant 0.000000e+00 : f32
    %108 = vector.broadcast %cst_99 : f32 to vector<128x4xf32>
    %109 = arith.maximumf %107, %108 : vector<128x4xf32>
    %cst_100 = arith.constant 0.000000e+00 : f32
    %110 = vector.broadcast %cst_100 : f32 to vector<1x4xf32>
    %c0_101 = arith.constant 0 : index
    %c0_102 = arith.constant 0 : index
    %111 = vector.load %arg10[%c0_101, %c0_102] : memref<130x4xf32, #tpu.memory_space<vmem>>, vector<1x4xf32>
    tpu.vector_store %arg10[%c0_101, %c0_102], %110 {strides = array<i32>} : memref<130x4xf32, #tpu.memory_space<vmem>>, vector<1x4xf32>,
    %cst_103 = arith.constant 0.000000e+00 : f32
    %112 = vector.broadcast %cst_103 : f32 to vector<1x4xf32>
    %c129 = arith.constant 129 : index
    %c0_104 = arith.constant 0 : index
    %113 = vector.load %arg10[%c129, %c0_104] : memref<130x4xf32, #tpu.memory_space<vmem>>, vector<1x4xf32>
    tpu.vector_store %arg10[%c129, %c0_104], %112 {strides = array<i32>} : memref<130x4xf32, #tpu.memory_space<vmem>>, vector<1x4xf32>,
    %c1_105 = arith.constant 1 : index
    %c0_106 = arith.constant 0 : index
    %114 = vector.load %arg10[%c1_105, %c0_106] : memref<130x4xf32, #tpu.memory_space<vmem>>, vector<128x4xf32>
    tpu.vector_store %arg10[%c1_105, %c0_106], %109 {strides = array<i32>} : memref<130x4xf32, #tpu.memory_space<vmem>>, vector<128x4xf32>,
    %115 = vector.extract_strided_slice %27 {offsets = [0, 0], sizes = [128, 1], strides = [1, 1]} : vector<160x1xi1> to vector<128x1xi1>
    %116 = vector.extract_strided_slice %29 {offsets = [0, 0], sizes = [128, 1], strides = [1, 1]} : vector<160x1xi1> to vector<128x1xi1>
    %c0_107 = arith.constant 0 : index
    %c0_108 = arith.constant 0 : index
    %117 = vector.load %arg10[%c0_107, %c0_108] : memref<130x4xf32, #tpu.memory_space<vmem>>, vector<128x4xf32>
    %c3 = arith.constant 3 : index
    %c0_109 = arith.constant 0 : index
    %c0_110 = arith.constant 0 : index
    %c0_111 = arith.constant 0 : index
    %118 = vector.load %arg4[%c3, %c0_109, %c0_110, %c0_111] : memref<4x3x4x4xf32, #tpu.memory_space<vmem>>, vector<1x1x4x4xf32>
    %119 = vector.shape_cast %118 : vector<1x1x4x4xf32> to vector<4x4xf32>
    %cst_112 = arith.constant dense<0.000000e+00> : vector<128x4xf32>
    %120 = tpu.matmul %117, %119, %cst_112 {dimension_numbers = #tpu.dot_dimension_numbers<[1], [0], [0], [1], [0, 0, 1, 1], [], []>} : vector<128x4xf32>, vector<4x4xf32>, vector<128x4xf32> -> vector<128x4xf32>
    %cst_113 = arith.constant 0.000000e+00 : f32
    %121 = vector.shape_cast %115 : vector<128x1xi1> to vector<128x1xi1>
    %122 = vector.broadcast %121 : vector<128x1xi1> to vector<128x4xi1>
    %123 = vector.broadcast %cst_113 : f32 to vector<128x4xf32>
    %124 = arith.select %122, %120, %123 : vector<128x4xi1>, vector<128x4xf32>
    %c1_114 = arith.constant 1 : index
    %c0_115 = arith.constant 0 : index
    %125 = vector.load %arg10[%c1_114, %c0_115] : memref<130x4xf32, #tpu.memory_space<vmem>>, vector<128x4xf32>
    %c3_116 = arith.constant 3 : index
    %c1_117 = arith.constant 1 : index
    %c0_118 = arith.constant 0 : index
    %c0_119 = arith.constant 0 : index
    %126 = vector.load %arg4[%c3_116, %c1_117, %c0_118, %c0_119] : memref<4x3x4x4xf32, #tpu.memory_space<vmem>>, vector<1x1x4x4xf32>
    %127 = vector.shape_cast %126 : vector<1x1x4x4xf32> to vector<4x4xf32>
    %cst_120 = arith.constant dense<0.000000e+00> : vector<128x4xf32>
    %128 = tpu.matmul %125, %127, %cst_120 {dimension_numbers = #tpu.dot_dimension_numbers<[1], [0], [0], [1], [0, 0, 1, 1], [], []>} : vector<128x4xf32>, vector<4x4xf32>, vector<128x4xf32> -> vector<128x4xf32>
    %129 = arith.addf %124, %128 : vector<128x4xf32>
    %c2_121 = arith.constant 2 : index
    %c0_122 = arith.constant 0 : index
    %130 = vector.load %arg10[%c2_121, %c0_122] : memref<130x4xf32, #tpu.memory_space<vmem>>, vector<128x4xf32>
    %c3_123 = arith.constant 3 : index
    %c2_124 = arith.constant 2 : index
    %c0_125 = arith.constant 0 : index
    %c0_126 = arith.constant 0 : index
    %131 = vector.load %arg4[%c3_123, %c2_124, %c0_125, %c0_126] : memref<4x3x4x4xf32, #tpu.memory_space<vmem>>, vector<1x1x4x4xf32>
    %132 = vector.shape_cast %131 : vector<1x1x4x4xf32> to vector<4x4xf32>
    %cst_127 = arith.constant dense<0.000000e+00> : vector<128x4xf32>
    %133 = tpu.matmul %130, %132, %cst_127 {dimension_numbers = #tpu.dot_dimension_numbers<[1], [0], [0], [1], [0, 0, 1, 1], [], []>} : vector<128x4xf32>, vector<4x4xf32>, vector<128x4xf32> -> vector<128x4xf32>
    %cst_128 = arith.constant 0.000000e+00 : f32
    %134 = vector.shape_cast %116 : vector<128x1xi1> to vector<128x1xi1>
    %135 = vector.broadcast %134 : vector<128x1xi1> to vector<128x4xi1>
    %136 = vector.broadcast %cst_128 : f32 to vector<128x4xf32>
    %137 = arith.select %135, %133, %136 : vector<128x4xi1>, vector<128x4xf32>
    %138 = arith.addf %129, %137 : vector<128x4xf32>
    %c3_129 = arith.constant 3 : index
    %c0_130 = arith.constant 0 : index
    %c0_131 = arith.constant 0 : index
    %139 = vector.load %arg5[%c3_129, %c0_130, %c0_131] : memref<4x1x4xf32, #tpu.memory_space<vmem>>, vector<1x1x4xf32>
    %140 = vector.shape_cast %139 : vector<1x1x4xf32> to vector<1x4xf32>
    %141 = vector.broadcast %140 : vector<1x4xf32> to vector<128x4xf32>
    %142 = arith.addf %138, %141 : vector<128x4xf32>
    %c0_132 = arith.constant 0 : index
    %c0_133 = arith.constant 0 : index
    %c0_134 = arith.constant 0 : index
    %143 = vector.load %arg2[%c0_132, %c0_133, %c0_134] : memref<1x128x4xf32, #tpu.memory_space<vmem>>, vector<1x128x4xf32>
    %144 = vector.shape_cast %143 : vector<1x128x4xf32> to vector<128x4xf32>
    %145 = arith.addf %142, %144 : vector<128x4xf32>
    %cst_135 = arith.constant 0.000000e+00 : f32
    %146 = vector.broadcast %cst_135 : f32 to vector<128x4xf32>
    %147 = arith.maximumf %145, %146 : vector<128x4xf32>
    %c0_136 = arith.constant 0 : index
    %c0_137 = arith.constant 0 : index
    %c0_138 = arith.constant 0 : index
    %148 = vector.load %arg6[%c0_136, %c0_137, %c0_138] : memref<1x128x4xf32, #tpu.memory_space<vmem>>, vector<1x128x4xf32>
    %149 = vector.shape_cast %148 : vector<1x128x4xf32> to vector<128x4xf32>
    %150 = vector.shape_cast %147 : vector<128x4xf32> to vector<1x128x4xf32>
    tpu.vector_store %arg6[%c0_136, %c0_137, %c0_138], %150 {strides = array<i32>} : memref<1x128x4xf32, #tpu.memory_space<vmem>>, vector<1x128x4xf32>,
    return
  }
  func.func @transform_0(%arg0: i32, %arg1: i32) -> (i32, i32, i32) {
    %c0_i32 = arith.constant 0 : i32
    %c0_i32_0 = arith.constant 0 : i32
    return %arg0, %arg1, %c0_i32 : i32, i32, i32
  }
  func.func @transform_1(%arg0: i32, %arg1: i32) -> (i32, i32, i32, i32) {
    %c0_i32 = arith.constant 0 : i32
    %c0_i32_0 = arith.constant 0 : i32
    %c0_i32_1 = arith.constant 0 : i32
    return %arg0, %arg1, %c0_i32, %c0_i32_0 : i32, i32, i32, i32
  }
  func.func @transform_2(%arg0: i32, %arg1: i32) -> (i32, i32, i32, i32) {
    %c0_i32 = arith.constant 0 : i32
    %c0_i32_0 = arith.constant 0 : i32
    %c0_i32_1 = arith.constant 0 : i32
    %c0_i32_2 = arith.constant 0 : i32
    %c0_i32_3 = arith.constant 0 : i32
    return %c0_i32, %c0_i32_0, %c0_i32_1, %c0_i32_2 : i32, i32, i32, i32
  }
  func.func @transform_3(%arg0: i32, %arg1: i32) -> (i32, i32, i32) {
    %c0_i32 = arith.constant 0 : i32
    %c0_i32_0 = arith.constant 0 : i32
    %c0_i32_1 = arith.constant 0 : i32
    %c0_i32_2 = arith.constant 0 : i32
    return %c0_i32, %c0_i32_0, %c0_i32_1 : i32, i32, i32
  }
  func.func @transform_4(%arg0: i32, %arg1: i32) -> (i32, i32, i32) {
    %c0_i32 = arith.constant 0 : i32
    %c0_i32_0 = arith.constant 0 : i32
    return %arg0, %arg1, %c0_i32 : i32, i32, i32
  }
}

</mosaic_0001>

<bundles_post_ra>
// kernel: tpu_custom_call.1
= control target key start
LH: loop header
LB: loop body
LE: loop exit
PB: predicated region body
PF: predicated region fallthrough
CT: control target
= control target key end

     0   :  { %s4967_s15 = smov 0   ;;  %s4969_s16 = smov 0   ;;  %s5850_s0 = inlined_call_operand.vmem [shape: f32[2,256,4], index: 0, kind: input, shape index: {}]   ;;  %s5851_s1 = inlined_call_operand.vmem [shape: f32[2,2,64,4], index: 1, kind: input, shape index: {}]   ;;  %s5852_s2 = inlined_call_operand.vmem [shape: f32[4,3,4,4], index: 2, kind: input, shape index: {}]   ;;  %s5853_s3 = inlined_call_operand.vmem [shape: f32[4,1,4], index: 3, kind: input, shape index: {}]   ;;  %s5854_s4 = inlined_call_operand.vmem [shape: f32[2,256,4], index: 4, kind: output, shape index: {}]  }
   0x1   :  { %s4971_s17 = smov 0   ;;  %s4973_s18 = smov 0  }
   0x2   :  { %s4975_s19 = smov 0  }
   0x3 LB: > { %s23_s20 = sadd.s32 1, %s4929_s17  ;;  %s26_s21 = sadd.s32 1, %s4933_s18  ;;  %s4937_s19 = sphi %s4975_s19, %s14_s19   ;;  %s4933_s18 = sphi %s4973_s18, %s5921_s18   ;;  %s4929_s17 = sphi %s4971_s17, %s5920_s17   ;;  %s4925_s16 = sphi %s4969_s16, %s5919_s16   ;;  %s4921_s15 = sphi %s4967_s15, %s5918_s15  }
   0x4   : > { %p24_p0 = scmp.ge.s32.totalorder %s23_s20, 2  ;;  %p3948_p1 = scmp.ge.s32.totalorder %s4937_s19, 1 }
   0x5   : > { %p199_p2 = scmp.lt.s32.totalorder %s4937_s19, 5 }
   0x6   : > { %s5923_s20 = smov (%p24_p0, %s23_s20), 0  ;;  %s5925_s21 = smov (!%p24_p0, %s26_s21), %s4933_s18 }
   0x7   : > { %p200_p3 = pnand %p3948_p1, %p199_p2  ;;  %p28_p4 = scmp.ge.s32.totalorder %s5925_s21, 2 }
   0x8   : > { %v3958_v0 = vld [vmem:[%s5852_s2 + $0x4] sm:$0xf] (!%p200_p3)  ;;  %vm5855_vm0 = vcmask (!%p200_p3), 1043456   ;;  %s3949_s24 = sshll.u32 (!%p200_p3), %s4921_s15, 4  ;;  %p243_p5 = scmp.lt.s32.totalorder (!%p200_p3), %s4925_s16, 1  ;;  %vm279_vm1 = vcmask (!%p200_p3), 31744  }
   0x9   : > { %s5927_s21 = smov (%p28_p4, %s5925_s21), 0  ;;  %203 = sbr.rel (%p200_p3) target bundleno = 1298 (0x512), region = 36 }
   0xa   : > { %4436 = vmatprep.subr.msk.mxu0 (!%p200_p3), %vm5855_vm0, %v3958_v0  ;;  %p245_p6 = scmp.lt.s32.totalorder (!%p200_p3), %s3949_s24, 31  ;;  %v5007_v1 = vld [vmem:[%s5852_s2] sm:$0xf] (!%p200_p3)  ;;  %p254_p7 = scmp.lt.s32.totalorder (!%p200_p3), %s4921_s15, 1  ;;  %v4001_v29 = vld [vmem:[%s5852_s2 + $0x8] sm:$0xf] (!%p200_p3) }
   0xb   : > { %4437 = vmatpush3.msk.msra.mxu0 (!%p200_p3), %vm5855_vm0, %v3958_v0  ;;  %vm5856_vm2 = vcmask (!%p200_p3), 24576   ;;  %v4939_v51 = vmov (!%p200_p3), 0.0   ;;  %v4024_v52 = vld [vmem:[%s5852_s2 + $0xc] sm:$0xf] (!%p200_p3)  ;;  %v4046_v53 = vld [vmem:[%s5852_s2 + $0x10] sm:$0xf] (!%p200_p3) }
   0xc   : > { %4468 = vmatprep.subr.msk.mxu0 (!%p200_p3), %vm5855_vm0, %v5007_v1  ;;  %1367 = vst.msk [vmem:[#allocation3] sm:$0x1] (!%p200_p3), %vm5856_vm2, %v4939_v51  ;;  %1368 = vst.msk [vmem:[#allocation3 + $0xa1] sm:$0x1] (!%p200_p3), %vm5856_vm2, %v4939_v51  ;;  %4532 = vmatprep.subr.msk.mxu1 (!%p200_p3), %vm5855_vm0, %v4024_v52  ;;  %v5159_v54 = vld [vmem:[%s5853_s3] ss:$0 sm:$0xff] (!%p200_p3) }
   0xd   : > { %4533 = vmatpush3.msk.msra.mxu1 (!%p200_p3), %vm5855_vm0, %v4024_v52  ;;  %p4092_p8 = scmp.ne.s32.totalorder (!%p200_p3), %s4921_s15, 0 }
   0xe   : > { %4564 = vmatprep.subr.msk.mxu1 (!%p200_p3), %vm5855_vm0, %v4046_v53 }
  0x10   : > { %s5929_s16 = smov (!%p243_p5, %s4925_s16), 1  ;;  %s5931_s24 = smov (!%p245_p6, %s3949_s24), 31 }
  0x11   : > { %s3950_s27 = sshll.u32 %s5929_s16, 5  ;;  %s3953_s30 = sshll.u32 %s5929_s16, 4 }
  0x12   : > { %s248_s28 = sadd.s32 %s3950_s27, %s5931_s24 }
  0x13   : > { %s3951_s29 = sshll.u32 %s248_s28, 3 }
  0x14   : > { %s5020_s7 = scalar_lea.vmem %s5850_s0, %s3951_s29  ;;  %s5025_s10 = scalar_lea.vmem %s5854_s4, %s3951_s29 }
  0x15   : > { %s255_s11 = scalar_select %p254_p7, %s4921_s15, 1  ;;  %v284_v2 = vld [vmem:[%s5020_s7] sm:$0xff]  ;;  %v285_v3 = vld [vmem:[%s5020_s7 + $0x8] sm:$0xff]  ;;  %v286_v4 = vld [vmem:[%s5020_s7 + $0x10] sm:$0xff] }
  0x16   : > { %300 = vst.msk [vmem:[#allocation2 + $0x20] sm:$0xff] %vm279_vm1, %v284_v2  ;;  %301 = vst.msk [vmem:[#allocation2 + $0x28] sm:$0xff] %vm279_vm1, %v285_v3  ;;  %v287_v5 = vld [vmem:[%s5020_s7 + $0x18] sm:$0xff]  ;;  %v288_v6 = vld [vmem:[%s5020_s7 + $0x20] sm:$0xff] }
  0x17   : > { %302 = vst.msk [vmem:[#allocation2 + $0x30] sm:$0xff] %vm279_vm1, %v286_v4  ;;  %v289_v7 = vld [vmem:[%s5020_s7 + $0x28] sm:$0xff]  ;;  %s3952_s12 = sshll.u32 %s255_s11, 3  ;;  %303 = vst.msk [vmem:[#allocation2 + $0x38] sm:$0xff] %vm279_vm1, %v287_v5  ;;  %v290_v8 = vld [vmem:[%s5020_s7 + $0x30] sm:$0xff] }
  0x18   : > { %304 = vst.msk [vmem:[#allocation2 + $0x40] sm:$0xff] %vm279_vm1, %v288_v6  ;;  %305 = vst.msk [vmem:[#allocation2 + $0x48] sm:$0xff] %vm279_vm1, %v289_v7  ;;  %v291_v9 = vld [vmem:[%s5020_s7 + $0x38] sm:$0xff]  ;;  %v292_v10 = vld [vmem:[%s5020_s7 + $0x40] sm:$0xff]  ;;  %s258_s13 = sadd.s32 %s3953_s30, %s3952_s12 }
  0x19   : > { %306 = vst.msk [vmem:[#allocation2 + $0x50] sm:$0xff] %vm279_vm1, %v290_v8  ;;  %307 = vst.msk [vmem:[#allocation2 + $0x58] sm:$0xff] %vm279_vm1, %v291_v9  ;;  %v293_v11 = vld [vmem:[%s5020_s7 + $0x48] sm:$0xff]  ;;  %v294_v12 = vld [vmem:[%s5020_s7 + $0x50] sm:$0xff]  ;;  %s3954_s14 = sshll.u32 %s258_s13, 3 }
  0x1a   : > { %308 = vst.msk [vmem:[#allocation2 + $0x60] sm:$0xff] %vm279_vm1, %v292_v10  ;;  %v295_v13 = vld [vmem:[%s5020_s7 + $0x58] sm:$0xff]  ;;  %309 = vst.msk [vmem:[#allocation2 + $0x68] sm:$0xff] %vm279_vm1, %v293_v11  ;;  %v296_v14 = vld [vmem:[%s5020_s7 + $0x60] sm:$0xff]  ;;  %s260_s23 = scalar_lea.vmem %s5851_s1, %s3954_s14 }
  0x1b   : > { %310 = vst.msk [vmem:[#allocation2 + $0x70] sm:$0xff] %vm279_vm1, %v294_v12  ;;  %311 = vst.msk [vmem:[#allocation2 + $0x78] sm:$0xff] %vm279_vm1, %v295_v13  ;;  %v297_v15 = vld [vmem:[%s5020_s7 + $0x68] sm:$0xff]  ;;  %v298_v16 = vld [vmem:[%s5020_s7 + $0x70] sm:$0xff] }
  0x1c   : > { %312 = vst.msk [vmem:[#allocation2 + $0x80] sm:$0xff] %vm279_vm1, %v296_v14  ;;  %313 = vst.msk [vmem:[#allocation2 + $0x88] sm:$0xff] %vm279_vm1, %v297_v15  ;;  %v299_v17 = vld [vmem:[%s5020_s7 + $0x78] sm:$0xff]  ;;  %v273_v18 = vld [vmem:[%s260_s23 + $0x10] sm:$0xff] }
  0x1d   : > { %314 = vst.msk [vmem:[#allocation2 + $0x90] sm:$0xff] %vm279_vm1, %v298_v16  ;;  %v274_v19 = vld [vmem:[%s260_s23 + $0x18] sm:$0xff]  ;;  %315 = vst.msk [vmem:[#allocation2 + $0x98] sm:$0xff] %vm279_vm1, %v299_v17  ;;  %v275_v20 = vld [vmem:[%s260_s23 + $0x20] sm:$0xff] }
  0x1e   : > { %282 = vst.msk [vmem:[#allocation2 + $0x10] sm:$0xff] %vm279_vm1, %v273_v18  ;;  %283 = vst.msk [vmem:[#allocation2 + $0x18] sm:$0xff] %vm279_vm1, %v274_v19  ;;  %v276_v21 = vld [vmem:[%s260_s23 + $0x28] sm:$0xff]  ;;  %v271_v22 = vld [vmem:[%s260_s23] sm:$0xff] }
  0x1f   : > { %316 = vst.msk [vmem:[#allocation2 + $0xa0] sm:$0xff] %vm279_vm1, %v275_v20  ;;  %v272_v23 = vld [vmem:[%s260_s23 + $0x8] sm:$0xff]  ;;  %317 = vst.msk [vmem:[#allocation2 + $0xa8] sm:$0xff] %vm279_vm1, %v276_v21  ;;  %v277_v24 = vld [vmem:[%s260_s23 + $0x30] sm:$0xff] }
  0x20   : > { %280 = vst.msk [vmem:[#allocation2] sm:$0xff] %vm279_vm1, %v271_v22  ;;  %281 = vst.msk [vmem:[#allocation2 + $0x8] sm:$0xff] %vm279_vm1, %v272_v23  ;;  %v278_v25 = vld [vmem:[%s260_s23 + $0x38] sm:$0xff]  ;;  %v5069_v28 = vld [vmem:[#allocation2 + $0x20] sm:$0xff] }
  0x21   : > { %318 = vst.msk [vmem:[#allocation2 + $0xb0] sm:$0xff] %vm279_vm1, %v277_v24  ;;  %319 = vst.msk [vmem:[#allocation2 + $0xb8] sm:$0xff] %vm279_vm1, %v278_v25  ;;  %v626_v30 = vld [vmem:[#allocation2 + $0x28] sm:$0xff]  ;;  %v627_v31 = vld [vmem:[#allocation2 + $0x30] sm:$0xff] }
  0x22   : > { %v628_v32 = vld [vmem:[#allocation2 + $0x38] sm:$0xff]  ;;  %v629_v33 = vld [vmem:[#allocation2 + $0x40] sm:$0xff]  ;;  %v630_v34 = vld [vmem:[#allocation2 + $0x48] sm:$0xff] }
  0x23   : > { %v631_v35 = vld [vmem:[#allocation2 + $0x50] sm:$0xff]  ;;  %v632_v36 = vld [vmem:[#allocation2 + $0x58] sm:$0xff]  ;;  %v633_v37 = vld [vmem:[#allocation2 + $0x60] sm:$0xff] }
  0x24   : > { %v634_v38 = vld [vmem:[#allocation2 + $0x68] sm:$0xff]  ;;  %v635_v39 = vld [vmem:[#allocation2 + $0x70] sm:$0xff]  ;;  %v636_v40 = vld [vmem:[#allocation2 + $0x78] sm:$0xff] }
  0x25   : > { %v623_v26 = vld [vmem:[#allocation2 + $0x10] sm:$0xff]  ;;  %v624_v27 = vld [vmem:[#allocation2 + $0x18] sm:$0xff]  ;;  %v637_v41 = vld [vmem:[#allocation2 + $0x80] sm:$0xff] }
  0x26   : > { %4438 = vmatprep.mubr.msk.f32.mxu0 %vm279_vm1, %v623_v26  ;;  %v638_v42 = vld [vmem:[#allocation2 + $0x88] sm:$0xff]  ;;  %v639_v43 = vld [vmem:[#allocation2 + $0x90] sm:$0xff]  ;;  %v640_v44 = vld [vmem:[#allocation2 + $0x98] sm:$0xff] }
  0x27   : > { %4439 = vmatmul.mubr.msk.f32.vlgmr.msra.gmra.mrb[0].mxu0 %vm279_vm1, %v624_v27  ;;  %v642_v45 = vld [vmem:[#allocation2 + $0xa0] sm:$0xff]  ;;  %v643_v46 = vld [vmem:[#allocation2 + $0xa8] sm:$0xff]  ;;  %v5179_v15 = vld [vmem:[%s5852_s2 + $0x14] sm:$0xf] }
  0x28   : > { %4469 = vmatpush3.msk.msra.mxu0 %vm5855_vm0, %v5007_v1  ;;  %4441 = vmatprep.mubr.msk.f32.mxu0 %vm279_vm1, %v5069_v28  ;;  %v621_v47 = vld [vmem:[#allocation2] sm:$0xff]  ;;  %v622_v48 = vld [vmem:[#allocation2 + $0x8] sm:$0xff]  ;;  %v1067_v49 = vld [vmem:[#allocation2 + $0xb0] sm:$0xff] }
  0x29   : > { %4500 = vmatprep.subr.msk.mxu0 %vm5855_vm0, %v4001_v29  ;;  %v1068_v50 = vld [vmem:[#allocation2 + $0xb8] sm:$0xff] }
  0x2b   : > { %4442 = vmatmul.mubr.msk.f32.gmra.mrb[2].mxu0 %vm279_vm1, %v626_v30 }
  0x2c   : > { %4444 = vmatprep.mubr.msk.f32.mxu0 %vm279_vm1, %v627_v31 }
  0x2f   : > { %4445 = vmatmul.mubr.msk.f32.gmra.mrb[4].mxu0 %vm279_vm1, %v628_v32 }
  0x30   : > { %4447 = vmatprep.mubr.msk.f32.mxu0 %vm279_vm1, %v629_v33 }
  0x33   : > { %4448 = vmatmul.mubr.msk.f32.gmra.mrb[6].mxu0 %vm279_vm1, %v630_v34 }
  0x34   : > { %4450 = vmatprep.mubr.msk.f32.mxu0 %vm279_vm1, %v631_v35 }
  0x37   : > { %4451 = vmatmul.mubr.msk.f32.gmra.mrb[8].mxu0 %vm279_vm1, %v632_v36 }
  0x38   : > { %4453 = vmatprep.mubr.msk.f32.mxu0 %vm279_vm1, %v633_v37 }
  0x3b   : > { %4454 = vmatmul.mubr.msk.f32.gmra.mrb[10].mxu0 %vm279_vm1, %v634_v38 }
  0x3c   : > { %4456 = vmatprep.mubr.msk.f32.mxu0 %vm279_vm1, %v635_v39 }
  0x3f   : > { %4457 = vmatmul.mubr.msk.f32.gmra.mrb[12].mxu0 %vm279_vm1, %v636_v40 }
  0x40   : > { %4459 = vmatprep.mubr.msk.f32.mxu0 %vm279_vm1, %v637_v41 }
  0x43   : > { %4460 = vmatmul.mubr.msk.f32.gmra.mrb[14].mxu0 %vm279_vm1, %v638_v42 }
  0x44   : > { %4462 = vmatprep.mubr.msk.f32.mxu0 %vm279_vm1, %v639_v43 }
  0x47   : > { %4463 = vmatmul.mubr.msk.f32.gmra.mrb[16].mxu0 %vm279_vm1, %v640_v44 }
  0x48   : > { %4465 = vmatprep.mubr.msk.f32.mxu0 %vm279_vm1, %v642_v45 }
  0x4b   : > { %4466 = vmatmul.mubr.msk.f32.gmra.mrb[18].mxu0 %vm279_vm1, %v643_v46 }
  0x4c   : > { %4470 = vmatprep.mubr.msk.f32.mxu0 %vm279_vm1, %v621_v47 }
  0x4f   : > { %4471 = vmatmul.mubr.msk.f32.vlgmr.msra.gmra.mrb[0].mxu0 %vm279_vm1, %v622_v48 }
  0x50   : > { %4501 = vmatpush3.msk.msra.mxu0 %vm5855_vm0, %v4001_v29  ;;  %4473 = vmatprep.mubr.msk.f32.mxu0 %vm279_vm1, %v623_v26 }
  0x53   : > { %4474 = vmatmul.mubr.msk.f32.gmra.mrb[2].mxu0 %vm279_vm1, %v624_v27 }
  0x54   : > { %4476 = vmatprep.mubr.msk.f32.mxu0 %vm279_vm1, %v5069_v28 }
  0x57   : > { %4477 = vmatmul.mubr.msk.f32.gmra.mrb[4].mxu0 %vm279_vm1, %v626_v30 }
  0x58   : > { %4479 = vmatprep.mubr.msk.f32.mxu0 %vm279_vm1, %v627_v31 }
  0x5b   : > { %4480 = vmatmul.mubr.msk.f32.gmra.mrb[6].mxu0 %vm279_vm1, %v628_v32 }
  0x5c   : > { %4482 = vmatprep.mubr.msk.f32.mxu0 %vm279_vm1, %v629_v33 }
  0x5f   : > { %4483 = vmatmul.mubr.msk.f32.gmra.mrb[8].mxu0 %vm279_vm1, %v630_v34 }
  0x60   : > { %4485 = vmatprep.mubr.msk.f32.mxu0 %vm279_vm1, %v631_v35 }
  0x63   : > { %4486 = vmatmul.mubr.msk.f32.gmra.mrb[10].mxu0 %vm279_vm1, %v632_v36 }
  0x64   : > { %4488 = vmatprep.mubr.msk.f32.mxu0 %vm279_vm1, %v633_v37 }
  0x67   : > { %4489 = vmatmul.mubr.msk.f32.gmra.mrb[12].mxu0 %vm279_vm1, %v634_v38 }
  0x68   : > { %4491 = vmatprep.mubr.msk.f32.mxu0 %vm279_vm1, %v635_v39 }
  0x6b   : > { %4492 = vmatmul.mubr.msk.f32.gmra.mrb[14].mxu0 %vm279_vm1, %v636_v40 }
  0x6c   : > { %4494 = vmatprep.mubr.msk.f32.mxu0 %vm279_vm1, %v637_v41 }
  0x6f   : > { %4495 = vmatmul.mubr.msk.f32.gmra.mrb[16].mxu0 %vm279_vm1, %v638_v42 }
  0x70   : > { %4497 = vmatprep.mubr.msk.f32.mxu0 %vm279_vm1, %v639_v43 }
  0x73   : > { %4498 = vmatmul.mubr.msk.f32.gmra.mrb[18].mxu0 %vm279_vm1, %v640_v44 }
  0x74   : > { %4502 = vmatprep.mubr.msk.f32.mxu0 %vm279_vm1, %v5069_v28 }
  0x77   : > { %4503 = vmatmul.mubr.msk.f32.vlgmr.msra.gmra.mrb[0].mxu0 %vm279_vm1, %v626_v30 }
  0x78   : > { %4505 = vmatprep.mubr.msk.f32.mxu0 %vm279_vm1, %v627_v31 }
  0x7b   : > { %4506 = vmatmul.mubr.msk.f32.gmra.mrb[2].mxu0 %vm279_vm1, %v628_v32 }
  0x7c   : > { %4508 = vmatprep.mubr.msk.f32.mxu0 %vm279_vm1, %v629_v33 }
  0x7f   : > { %4509 = vmatmul.mubr.msk.f32.gmra.mrb[4].mxu0 %vm279_vm1, %v630_v34 }
  0x80   : > { %4511 = vmatprep.mubr.msk.f32.mxu0 %vm279_vm1, %v631_v35 }
  0x83   : > { %4512 = vmatmul.mubr.msk.f32.gmra.mrb[6].mxu0 %vm279_vm1, %v632_v36 }
  0x84   : > { %4514 = vmatprep.mubr.msk.f32.mxu0 %vm279_vm1, %v633_v37 }
  0x87   : > { %4515 = vmatmul.mubr.msk.f32.gmra.mrb[8].mxu0 %vm279_vm1, %v634_v38 }
  0x88   : > { %4517 = vmatprep.mubr.msk.f32.mxu0 %vm279_vm1, %v635_v39 }
  0x8b   : > { %4518 = vmatmul.mubr.msk.f32.gmra.mrb[10].mxu0 %vm279_vm1, %v636_v40 }
  0x8c   : > { %4520 = vmatprep.mubr.msk.f32.mxu0 %vm279_vm1, %v637_v41 }
  0x8f   : > { %4521 = vmatmul.mubr.msk.f32.gmra.mrb[12].mxu0 %vm279_vm1, %v638_v42 }
  0x90   : > { %4523 = vmatprep.mubr.msk.f32.mxu0 %vm279_vm1, %v639_v43 }
  0x93   : > { %4524 = vmatmul.mubr.msk.f32.gmra.mrb[14].mxu0 %vm279_vm1, %v640_v44 }
  0x94   : > { %4526 = vmatprep.mubr.msk.f32.mxu0 %vm279_vm1, %v642_v45 }
  0x97   : > { %4527 = vmatmul.mubr.msk.f32.gmra.mrb[16].mxu0 %vm279_vm1, %v643_v46 }
  0x98   : > { %4529 = vmatprep.mubr.msk.f32.mxu0 %vm279_vm1, %v1067_v49 }
  0x9b   : > { %4530 = vmatmul.mubr.msk.f32.gmra.mrb[18].mxu0 %vm279_vm1, %v1068_v50 }
 0x14a   : > { %v4504_v55 = vpop.f32.mrb[0].mxu0 }
 0x14b   : > { %v1327_v56 = vadd.f32 %v4504_v55, %v5159_v54  ;;  %v1200_v57 = vpop.f32.mrb[1].mxu0 }
 0x14c   : > { %v1326_v58 = vadd.f32 %v5159_v54, %v1200_v57 }
 0x14d   : > { %v1347_v59 = vmax.f32 %v1327_v56, 0.0 }
 0x14e   : > { %v1346_v60 = vmax.f32 %v1326_v58, 0.0  ;;  %v4507_v61 = vpop.f32.mrb[2].mxu0 }
 0x14f   : > { %1370 = vst.msk [vmem:[#allocation3 + $0x9] sm:$0xff] %vm279_vm1, %v1347_v59  ;;  %v1329_v62 = vadd.f32 %v4507_v61, %v5159_v54  ;;  %v1210_v63 = vpop.f32.mrb[3].mxu0 }
 0x150   : > { %1369 = vst.msk [vmem:[#allocation3 + $0x1] sm:$0xff] %vm279_vm1, %v1346_v60  ;;  %v1328_v0 = vadd.f32 %v5159_v54, %v1210_v63 }
 0x151   : > { %v1349_v1 = vmax.f32 %v1329_v62, 0.0 }
 0x152   : > { %v1348_v2 = vmax.f32 %v1328_v0, 0.0  ;;  %v4510_v3 = vpop.f32.mrb[4].mxu0 }
 0x153   : > { %1372 = vst.msk [vmem:[#allocation3 + $0x19] sm:$0xff] %vm279_vm1, %v1349_v1  ;;  %v1331_v4 = vadd.f32 %v4510_v3, %v5159_v54  ;;  %v1220_v5 = vpop.f32.mrb[5].mxu0 }
 0x154   : > { %1371 = vst.msk [vmem:[#allocation3 + $0x11] sm:$0xff] %vm279_vm1, %v1348_v2  ;;  %v1330_v6 = vadd.f32 %v5159_v54, %v1220_v5 }
 0x155   : > { %v1351_v7 = vmax.f32 %v1331_v4, 0.0 }
 0x156   : > { %v1350_v8 = vmax.f32 %v1330_v6, 0.0  ;;  %v4513_v9 = vpop.f32.mrb[6].mxu0 }
 0x157   : > { %1374 = vst.msk [vmem:[#allocation3 + $0x29] sm:$0xff] %vm279_vm1, %v1351_v7  ;;  %v1333_v10 = vadd.f32 %v4513_v9, %v5159_v54  ;;  %v1230_v11 = vpop.f32.mrb[7].mxu0  ;;  %v1389_v12 = vld [vmem:[#allocation3] sm:$0xff]  ;;  %v1390_v13 = vld [vmem:[#allocation3 + $0x8] sm:$0xff] }
 0x158   : > { %1373 = vst.msk [vmem:[#allocation3 + $0x21] sm:$0xff] %vm279_vm1, %v1350_v8  ;;  %v1332_v14 = vadd.f32 %v5159_v54, %v1230_v11  ;;  %4534 = vmatprep.mubr.msk.f32.mxu1 %vm279_vm1, %v1389_v12  ;;  %v1699_v9 = vld [vmem:[#allocation3 + $0x1] sm:$0xff] }
 0x159   : > { %v1353_v16 = vmax.f32 %v1333_v10, 0.0  ;;  %4535 = vmatmul.mubr.msk.f32.vlgmr.msra.gmra.mrb[0].mxu1 %vm279_vm1, %v1390_v13  ;;  %v1700_v10 = vld [vmem:[#allocation3 + $0x9] sm:$0xff] }
 0x15a   : > { %v1352_v17 = vmax.f32 %v1332_v14, 0.0  ;;  %4565 = vmatpush3.msk.msra.mxu1 %vm5855_vm0, %v4046_v53  ;;  %v4516_v18 = vpop.f32.mrb[8].mxu0  ;;  %v1702_v12 = vld [vmem:[#allocation3 + $0x19] sm:$0xff] }
 0x15b   : > { %1376 = vst.msk [vmem:[#allocation3 + $0x39] sm:$0xff] %vm279_vm1, %v1353_v16  ;;  %v1335_v19 = vadd.f32 %v4516_v18, %v5159_v54  ;;  %v1240_v20 = vpop.f32.mrb[9].mxu0  ;;  %v1391_v21 = vld [vmem:[#allocation3 + $0x10] sm:$0xff]  ;;  %v1392_v22 = vld [vmem:[#allocation3 + $0x18] sm:$0xff]  ;;  %4596 = vmatprep.subr.msk.mxu1 %vm5855_vm0, %v5179_v15 }
 0x15c   : > { %1375 = vst.msk [vmem:[#allocation3 + $0x31] sm:$0xff] %vm279_vm1, %v1352_v17  ;;  %v1334_v23 = vadd.f32 %v5159_v54, %v1240_v20  ;;  %4537 = vmatprep.mubr.msk.f32.mxu1 %vm279_vm1, %v1391_v21  ;;  %v1701_v11 = vld [vmem:[#allocation3 + $0x11] sm:$0xff] }
 0x15d   : > { %v1355_v24 = vmax.f32 %v1335_v19, 0.0  ;;  %4538 = vmatmul.mubr.msk.f32.gmra.mrb[2].mxu1 %vm279_vm1, %v1392_v22 }
 0x15e   : > { %v1354_v25 = vmax.f32 %v1334_v23, 0.0  ;;  %v4519_v26 = vpop.f32.mrb[10].mxu0  ;;  %v1704_v14 = vld [vmem:[#allocation3 + $0x29] sm:$0xff] }
 0x15f   : > { %1378 = vst.msk [vmem:[#allocation3 + $0x49] sm:$0xff] %vm279_vm1, %v1355_v24  ;;  %v1337_v27 = vadd.f32 %v4519_v26, %v5159_v54  ;;  %v1250_v28 = vpop.f32.mrb[11].mxu0  ;;  %v1393_v29 = vld [vmem:[#allocation3 + $0x20] sm:$0xff]  ;;  %v1394_v30 = vld [vmem:[#allocation3 + $0x28] sm:$0xff] }
 0x160   : > { %1377 = vst.msk [vmem:[#allocation3 + $0x41] sm:$0xff] %vm279_vm1, %v1354_v25  ;;  %v1336_v31 = vadd.f32 %v5159_v54, %v1250_v28  ;;  %4540 = vmatprep.mubr.msk.f32.mxu1 %vm279_vm1, %v1393_v29  ;;  %v1703_v13 = vld [vmem:[#allocation3 + $0x21] sm:$0xff] }
 0x161   : > { %v1357_v32 = vmax.f32 %v1337_v27, 0.0  ;;  %4541 = vmatmul.mubr.msk.f32.gmra.mrb[4].mxu1 %vm279_vm1, %v1394_v30  ;;  %v1969_v29 = vld [vmem:[#allocation3 + $0x2] sm:$0xff]  ;;  %v1970_v30 = vld [vmem:[#allocation3 + $0xa] sm:$0xff] }
 0x162   : > { %v1356_v33 = vmax.f32 %v1336_v31, 0.0  ;;  %v4522_v34 = vpop.f32.mrb[12].mxu0  ;;  %v1706_v17 = vld [vmem:[#allocation3 + $0x39] sm:$0xff] }
 0x163   : > { %1380 = vst.msk [vmem:[#allocation3 + $0x59] sm:$0xff] %vm279_vm1, %v1357_v32  ;;  %v1339_v35 = vadd.f32 %v4522_v34, %v5159_v54  ;;  %v1260_v36 = vpop.f32.mrb[13].mxu0  ;;  %v1395_v37 = vld [vmem:[#allocation3 + $0x30] sm:$0xff]  ;;  %v1396_v38 = vld [vmem:[#allocation3 + $0x38] sm:$0xff] }
 0x164   : > { %1379 = vst.msk [vmem:[#allocation3 + $0x51] sm:$0xff] %vm279_vm1, %v1356_v33  ;;  %v1338_v39 = vadd.f32 %v5159_v54, %v1260_v36  ;;  %4543 = vmatprep.mubr.msk.f32.mxu1 %vm279_vm1, %v1395_v37  ;;  %v1705_v16 = vld [vmem:[#allocation3 + $0x31] sm:$0xff]  ;;  %v1972_v32 = vld [vmem:[#allocation3 + $0x1a] sm:$0xff]  ;;  %v1973_v33 = vld [vmem:[#allocation3 + $0x22] sm:$0xff] }
 0x165   : > { %v1359_v40 = vmax.f32 %v1339_v35, 0.0  ;;  %4544 = vmatmul.mubr.msk.f32.gmra.mrb[6].mxu1 %vm279_vm1, %v1396_v38  ;;  %v1971_v31 = vld [vmem:[#allocation3 + $0x12] sm:$0xff]  ;;  %v1974_v34 = vld [vmem:[#allocation3 + $0x2a] sm:$0xff] }
 0x166   : > { %v1358_v41 = vmax.f32 %v1338_v39, 0.0  ;;  %v4525_v42 = vpop.f32.mrb[14].mxu0  ;;  %v1975_v35 = vld [vmem:[#allocation3 + $0x32] sm:$0xff] }
 0x167   : > { %1382 = vst.msk [vmem:[#allocation3 + $0x69] sm:$0xff] %vm279_vm1, %v1359_v40  ;;  %v1341_v43 = vadd.f32 %v4525_v42, %v5159_v54  ;;  %v1270_v44 = vpop.f32.mrb[15].mxu0  ;;  %v1397_v45 = vld [vmem:[#allocation3 + $0x40] sm:$0xff]  ;;  %v1398_v46 = vld [vmem:[#allocation3 + $0x48] sm:$0xff] }
 0x168   : > { %1381 = vst.msk [vmem:[#allocation3 + $0x61] sm:$0xff] %vm279_vm1, %v1358_v41  ;;  %v1340_v47 = vadd.f32 %v5159_v54, %v1270_v44  ;;  %4546 = vmatprep.mubr.msk.f32.mxu1 %vm279_vm1, %v1397_v45  ;;  %v1707_v18 = vld [vmem:[#allocation3 + $0x41] sm:$0xff] }
 0x169   : > { %v1361_v48 = vmax.f32 %v1341_v43, 0.0  ;;  %4547 = vmatmul.mubr.msk.f32.gmra.mrb[8].mxu1 %vm279_vm1, %v1398_v46  ;;  %v1976_v36 = vld [vmem:[#allocation3 + $0x3a] sm:$0xff]  ;;  %v1977_v37 = vld [vmem:[#allocation3 + $0x42] sm:$0xff] }
 0x16a   : > { %v1360_v49 = vmax.f32 %v1340_v47, 0.0  ;;  %v4528_v50 = vpop.f32.mrb[16].mxu0  ;;  %v1710_v20 = vld [vmem:[#allocation3 + $0x59] sm:$0xff] }
 0x16b   : > { %1384 = vst.msk [vmem:[#allocation3 + $0x79] sm:$0xff] %vm279_vm1, %v1361_v48  ;;  %v1343_v52 = vadd.f32 %v4528_v50, %v5159_v54  ;;  %v1280_v53 = vpop.f32.mrb[17].mxu0  ;;  %v1399_v55 = vld [vmem:[#allocation3 + $0x50] sm:$0xff]  ;;  %v1400_v56 = vld [vmem:[#allocation3 + $0x58] sm:$0xff] }
 0x16c   : > { %1383 = vst.msk [vmem:[#allocation3 + $0x71] sm:$0xff] %vm279_vm1, %v1360_v49  ;;  %v1342_v57 = vadd.f32 %v5159_v54, %v1280_v53  ;;  %4549 = vmatprep.mubr.msk.f32.mxu1 %vm279_vm1, %v1399_v55  ;;  %v1709_v19 = vld [vmem:[#allocation3 + $0x51] sm:$0xff] }
 0x16d   : > { %v1363_v58 = vmax.f32 %v1343_v52, 0.0  ;;  %4550 = vmatmul.mubr.msk.f32.gmra.mrb[10].mxu1 %vm279_vm1, %v1400_v56  ;;  %v1978_v38 = vld [vmem:[#allocation3 + $0x4a] sm:$0xff]  ;;  %v1979_v39 = vld [vmem:[#allocation3 + $0x52] sm:$0xff] }
 0x16e   : > { %v1362_v59 = vmax.f32 %v1342_v57, 0.0  ;;  %v4531_v60 = vpop.f32.mrb[18].mxu0  ;;  %v1712_v22 = vld [vmem:[#allocation3 + $0x69] sm:$0xff] }
 0x16f   : > { %1386 = vst.msk [vmem:[#allocation3 + $0x89] sm:$0xff] %vm279_vm1, %v1363_v58  ;;  %v1345_v61 = vadd.f32 %v4531_v60, %v5159_v54  ;;  %v1290_v62 = vpop.f32.mrb[19].mxu0  ;;  %v1401_v63 = vld [vmem:[#allocation3 + $0x60] sm:$0xff]  ;;  %v1402_v0 = vld [vmem:[#allocation3 + $0x68] sm:$0xff] }
 0x170   : > { %1385 = vst.msk [vmem:[#allocation3 + $0x81] sm:$0xff] %vm279_vm1, %v1362_v59  ;;  %v1344_v1 = vadd.f32 %v5159_v54, %v1290_v62  ;;  %4552 = vmatprep.mubr.msk.f32.mxu1 %vm279_vm1, %v1401_v63  ;;  %v1711_v21 = vld [vmem:[#allocation3 + $0x61] sm:$0xff] }
 0x171   : > { %v1365_v2 = vmax.f32 %v1345_v61, 0.0  ;;  %4553 = vmatmul.mubr.msk.f32.gmra.mrb[12].mxu1 %vm279_vm1, %v1402_v0  ;;  %v1980_v40 = vld [vmem:[#allocation3 + $0x5a] sm:$0xff]  ;;  %v1981_v41 = vld [vmem:[#allocation3 + $0x62] sm:$0xff] }
 0x172   : > { %v1364_v3 = vmax.f32 %v1344_v1, 0.0  ;;  %v1714_v24 = vld [vmem:[#allocation3 + $0x79] sm:$0xff]  ;;  %v320_v1 = vlaneseq }
 0x173   : > { %1388 = vst.msk [vmem:[#allocation3 + $0x99] sm:$0xff] %vm279_vm1, %v1365_v2  ;;  %v1403_v4 = vld [vmem:[#allocation3 + $0x70] sm:$0xff]  ;;  %v1404_v5 = vld [vmem:[#allocation3 + $0x78] sm:$0xff] }
 0x174   : > { %1387 = vst.msk [vmem:[#allocation3 + $0x91] sm:$0xff] %vm279_vm1, %v1364_v3  ;;  %4555 = vmatprep.mubr.msk.f32.mxu1 %vm279_vm1, %v1403_v4  ;;  %v1713_v23 = vld [vmem:[#allocation3 + $0x71] sm:$0xff]  ;;  %v5281_v4 = vshrl.u32 %v320_v1, 7 }
 0x175   : > { %4556 = vmatmul.mubr.msk.f32.gmra.mrb[14].mxu1 %vm279_vm1, %v1404_v5  ;;  %v1982_v42 = vld [vmem:[#allocation3 + $0x6a] sm:$0xff]  ;;  %v1983_v43 = vld [vmem:[#allocation3 + $0x72] sm:$0xff] }
 0x176   : > { %v1716_v26 = vld [vmem:[#allocation3 + $0x89] sm:$0xff]  ;;  %v337_v1 = vadd.s32 128, %v5281_v4 }
 0x177   : > { %v1405_v6 = vld [vmem:[#allocation3 + $0x80] sm:$0xff]  ;;  %v1406_v7 = vld [vmem:[#allocation3 + $0x88] sm:$0xff] }
 0x178   : > { %4558 = vmatprep.mubr.msk.f32.mxu1 %vm279_vm1, %v1405_v6  ;;  %v1715_v25 = vld [vmem:[#allocation3 + $0x81] sm:$0xff] }
 0x179   : > { %4559 = vmatmul.mubr.msk.f32.gmra.mrb[16].mxu1 %vm279_vm1, %v1406_v7  ;;  %v1984_v44 = vld [vmem:[#allocation3 + $0x7a] sm:$0xff]  ;;  %v1985_v45 = vld [vmem:[#allocation3 + $0x82] sm:$0xff]  ;;  %v345_v7 = vand.u32 15, %v5281_v4 }
 0x17a   : > { %v1718_v28 = vld [vmem:[#allocation3 + $0x99] sm:$0xff] }
 0x17b   : > { %v1407_v54 = vld [vmem:[#allocation3 + $0x90] sm:$0xff]  ;;  %v1408_v8 = vld [vmem:[#allocation3 + $0x98] sm:$0xff]  ;;  %vm5293_vm3 = vcmp.ge.s32.totalorder %v345_v7, 1 }
 0x17c   : > { %4561 = vmatprep.mubr.msk.f32.mxu1 %vm279_vm1, %v1407_v54  ;;  %v1717_v27 = vld [vmem:[#allocation3 + $0x91] sm:$0xff]  ;;  %v1988_v48 = vld [vmem:[#allocation3 + $0x9a] sm:$0xff]  ;;  %v323_v54 = vadd.s32 16, %v5281_v4 }
 0x17d   : > { %4562 = vmatmul.mubr.msk.f32.gmra.mrb[18].mxu1 %vm279_vm1, %v1408_v8  ;;  %v1986_v46 = vld [vmem:[#allocation3 + $0x8a] sm:$0xff]  ;;  %v1987_v47 = vld [vmem:[#allocation3 + $0x92] sm:$0xff] }
 0x17e   : > { %4566 = vmatprep.mubr.msk.f32.mxu1 %vm279_vm1, %v1699_v9 }
 0x181   : > { %4567 = vmatmul.mubr.msk.f32.vlgmr.msra.gmra.mrb[20].mxu1 %vm279_vm1, %v1700_v10 }
 0x182   : > { %4597 = vmatpush3.msk.msra.mxu1 %vm5855_vm0, %v5179_v15  ;;  %4569 = vmatprep.mubr.msk.f32.mxu1 %vm279_vm1, %v1701_v11  ;;  %v1708_v15 = vld [vmem:[#allocation3 + $0x49] sm:$0xff]  ;;  %v359_v11 = vand.u32 15, %v323_v54 }
 0x184   : > { %vm5302_vm4 = vcmp.ge.s32.totalorder %v359_v11, 1 }
 0x185   : > { %4570 = vmatmul.mubr.msk.f32.gmra.mrb[22].mxu1 %vm279_vm1, %v1702_v12  ;;  %v325_v12 = vadd.s32 32, %v5281_v4 }
 0x186   : > { %4572 = vmatprep.mubr.msk.f32.mxu1 %vm279_vm1, %v1703_v13 }
 0x189   : > { %4573 = vmatmul.mubr.msk.f32.gmra.mrb[24].mxu1 %vm279_vm1, %v1704_v14 }
 0x18a   : > { %4575 = vmatprep.mubr.msk.f32.mxu1 %vm279_vm1, %v1705_v16 }
 0x18d   : > { %4576 = vmatmul.mubr.msk.f32.gmra.mrb[26].mxu1 %vm279_vm1, %v1706_v17 }
 0x18e   : > { %4578 = vmatprep.mubr.msk.f32.mxu1 %vm279_vm1, %v1707_v18 }
 0x191   : > { %4579 = vmatmul.mubr.msk.f32.gmra.mrb[28].mxu1 %vm279_vm1, %v1708_v15  ;;  %v373_v15 = vand.u32 15, %v325_v12 }
 0x192   : > { %4581 = vmatprep.mubr.msk.f32.mxu1 %vm279_vm1, %v1709_v19  ;;  %v327_v19 = vadd.s32 48, %v5281_v4 }
 0x193   : > { %vm5313_vm5 = vcmp.ge.s32.totalorder %v373_v15, 1 }
 0x195   : > { %4582 = vmatmul.mubr.msk.f32.gmra.mrb[30].mxu1 %vm279_vm1, %v1710_v20 }
 0x196   : > { %4584 = vmatprep.mubr.msk.f32.mxu1 %vm279_vm1, %v1711_v21 }
 0x199   : > { %4585 = vmatmul.mubr.msk.f32.gmra.mrb[32].mxu1 %vm279_vm1, %v1712_v22 }
 0x19a   : > { %4587 = vmatprep.mubr.msk.f32.mxu1 %vm279_vm1, %v1713_v23 }
 0x19d   : > { %4588 = vmatmul.mubr.msk.f32.gmra.mrb[34].mxu1 %vm279_vm1, %v1714_v24 }
 0x19e   : > { %4590 = vmatprep.mubr.msk.f32.mxu1 %vm279_vm1, %v1715_v25 }
 0x1a1   : > { %4591 = vmatmul.mubr.msk.f32.gmra.mrb[36].mxu1 %vm279_vm1, %v1716_v26  ;;  %v387_v26 = vand.u32 15, %v327_v19 }
 0x1a2   : > { %4593 = vmatprep.mubr.msk.f32.mxu1 %vm279_vm1, %v1717_v27  ;;  %v329_v27 = vadd.s32 64, %v5281_v4 }
 0x1a3   : > { %vm5324_vm6 = vcmp.ge.s32.totalorder %v387_v26, 1 }
 0x1a5   : > { %4594 = vmatmul.mubr.msk.f32.gmra.mrb[38].mxu1 %vm279_vm1, %v1718_v28 }
 0x1a6   : > { %4598 = vmatprep.mubr.msk.f32.mxu1 %vm279_vm1, %v1969_v29 }
 0x1a9   : > { %4599 = vmatmul.mubr.msk.f32.vlgmr.msra.gmra.mrb[40].mxu1 %vm279_vm1, %v1970_v30 }
 0x1aa   : > { %4601 = vmatprep.mubr.msk.f32.mxu1 %vm279_vm1, %v1971_v31 }
 0x1ad   : > { %4602 = vmatmul.mubr.msk.f32.gmra.mrb[42].mxu1 %vm279_vm1, %v1972_v32 }
 0x1ae   : > { %4604 = vmatprep.mubr.msk.f32.mxu1 %vm279_vm1, %v1973_v33 }
 0x1b1   : > { %4605 = vmatmul.mubr.msk.f32.gmra.mrb[44].mxu1 %vm279_vm1, %v1974_v34  ;;  %v401_v34 = vand.u32 15, %v329_v27 }
 0x1b2   : > { %4607 = vmatprep.mubr.msk.f32.mxu1 %vm279_vm1, %v1975_v35  ;;  %v331_v35 = vadd.s32 80, %v5281_v4 }
 0x1b3   : > { %vm5335_vm7 = vcmp.ge.s32.totalorder %v401_v34, 1 }
 0x1b5   : > { %4608 = vmatmul.mubr.msk.f32.gmra.mrb[46].mxu1 %vm279_vm1, %v1976_v36 }
 0x1b6   : > { %4610 = vmatprep.mubr.msk.f32.mxu1 %vm279_vm1, %v1977_v37 }
 0x1b9   : > { %4611 = vmatmul.mubr.msk.f32.gmra.mrb[48].mxu1 %vm279_vm1, %v1978_v38 }
 0x1ba   : > { %4613 = vmatprep.mubr.msk.f32.mxu1 %vm279_vm1, %v1979_v39 }
 0x1bd   : > { %4614 = vmatmul.mubr.msk.f32.gmra.mrb[50].mxu1 %vm279_vm1, %v1980_v40 }
 0x1be   : > { %4616 = vmatprep.mubr.msk.f32.mxu1 %vm279_vm1, %v1981_v41 }
 0x1c1   : > { %4617 = vmatmul.mubr.msk.f32.gmra.mrb[52].mxu1 %vm279_vm1, %v1982_v42  ;;  %v415_v42 = vand.u32 15, %v331_v35 }
 0x1c2   : > { %4619 = vmatprep.mubr.msk.f32.mxu1 %vm279_vm1, %v1983_v43  ;;  %v333_v43 = vadd.s32 96, %v5281_v4 }
 0x1c3   : > { %vm5346_vm8 = vcmp.ge.s32.totalorder %v415_v42, 1 }
 0x1c5   : > { %4620 = vmatmul.mubr.msk.f32.gmra.mrb[54].mxu1 %vm279_vm1, %v1984_v44 }
 0x1c6   : > { %4622 = vmatprep.mubr.msk.f32.mxu1 %vm279_vm1, %v1985_v45 }
 0x1c9   : > { %4623 = vmatmul.mubr.msk.f32.gmra.mrb[56].mxu1 %vm279_vm1, %v1986_v46 }
 0x1ca   : > { %4625 = vmatprep.mubr.msk.f32.mxu1 %vm279_vm1, %v1987_v47 }
 0x1cd   : > { %4626 = vmatmul.mubr.msk.f32.gmra.mrb[58].mxu1 %vm279_vm1, %v1988_v48 }
 0x22c   : > { %v4536_v49 = vpop.f32.mrb[0].mxu1 }
 0x22d   : > { %v1540_v50 = vpop.f32.mrb[1].mxu1 }
 0x22e   : > { %v1679_v14 = vsel %vm5293_vm3, %v1540_v50, 0.0  ;;  %v429_v50 = vand.u32 15, %v333_v43 }
 0x230   : > { %v4539_v52 = vpop.f32.mrb[2].mxu1  ;;  %vm5358_vm9 = vcmp.ge.s32.totalorder %v429_v50, 1 }
 0x231   : > { %v1550_v53 = vpop.f32.mrb[3].mxu1 }
 0x232   : > { %v1681_v22 = vsel %vm5302_vm4, %v1550_v53, 0.0 }
 0x234   : > { %v4542_v55 = vpop.f32.mrb[4].mxu1 }
 0x235   : > { %v1560_v56 = vpop.f32.mrb[5].mxu1 }
 0x236   : > { %v1683_v30 = vsel %vm5313_vm5, %v1560_v56, 0.0 }
 0x238   : > { %v4545_v57 = vpop.f32.mrb[6].mxu1 }
 0x239   : > { %v1570_v58 = vpop.f32.mrb[7].mxu1 }
 0x23a   : > { %v1685_v38 = vsel %vm5324_vm6, %v1570_v58, 0.0 }
 0x23c   : > { %v4548_v59 = vpop.f32.mrb[8].mxu1 }
 0x23d   : > { %v1580_v60 = vpop.f32.mrb[9].mxu1 }
 0x23e   : > { %v1687_v46 = vsel %vm5335_vm7, %v1580_v60, 0.0 }
 0x240   : > { %v4551_v61 = vpop.f32.mrb[10].mxu1 }
 0x241   : > { %v5271_v62 = vpop.f32.mrb[11].mxu1 }
 0x242   : > { %v1689_v56 = vsel %vm5346_vm8, %v5271_v62, 0.0 }
 0x244   : > { %v5273_v63 = vpop.f32.mrb[12].mxu1 }
 0x245   : > { %v5275_v0 = vpop.f32.mrb[13].mxu1 }
 0x246   : > { %v1691_v11 = vsel %vm5358_vm9, %v5275_v0, 0.0 }
 0x248   : > { %v5277_v2 = vpop.f32.mrb[14].mxu1 }
 0x249   : > { %v5279_v3 = vpop.f32.mrb[15].mxu1 }
 0x24c   : > { %v5283_v5 = vpop.f32.mrb[16].mxu1 }
 0x24d   : > { %v5285_v6 = vpop.f32.mrb[17].mxu1 }
 0x250   : > { %v5289_v8 = vpop.f32.mrb[18].mxu1 }
 0x251   : > { %v5291_v9 = vpop.f32.mrb[19].mxu1 }
 0x254   : > { %v4568_v13 = vpop.f32.mrb[20].mxu1 }
 0x255   : > { %v5300_v16 = vadd.f32 %v4568_v13, %v4536_v49  ;;  %v1850_v17 = vpop.f32.mrb[21].mxu1  ;;  %v457_v13 = vand.u32 15, %v337_v1 }
 0x256   : > { %v5307_v20 = vadd.f32 %v1850_v17, %v1679_v14  ;;  %v339_v14 = vadd.s32 144, %v5281_v4 }
 0x257   : > { %vm597_vm11 = vcmp.ge.s32.totalorder %v457_v13, 1 }
 0x258   : > { %v4571_v21 = vpop.f32.mrb[22].mxu1  ;;  %v1695_v27 = vsel %vm597_vm11, %v5285_v6, 0.0 }
 0x259   : > { %v5311_v23 = vadd.f32 %v4571_v21, %v4539_v52  ;;  %v1860_v24 = vpop.f32.mrb[23].mxu1  ;;  %v335_v52 = vadd.s32 112, %v5281_v4  ;;  %v471_v21 = vand.u32 15, %v339_v14 }
 0x25a   : > { %v5318_v28 = vadd.f32 %v1860_v24, %v1681_v22  ;;  %v322_v24 = vadd.s32 8, %v5281_v4 }
 0x25b   : > { %v443_v60 = vand.u32 15, %v335_v52  ;;  %vm599_vm12 = vcmp.ge.s32.totalorder %v471_v21, 1 }
 0x25c   : > { %v4574_v29 = vpop.f32.mrb[24].mxu1  ;;  %v1697_v35 = vsel %vm599_vm12, %v5291_v9, 0.0  ;;  %v5410_v9 = vld [vmem:[%s5853_s3 + $0x1] ss:$0 sm:$0xff] }
 0x25d   : > { %v5322_v31 = vadd.f32 %v4574_v29, %v4542_v55  ;;  %v1870_v32 = vpop.f32.mrb[25].mxu1  ;;  %vm5371_vm10 = vcmp.ge.s32.totalorder %v443_v60, 1 }
 0x25e   : > { %v5329_v36 = vadd.f32 %v1870_v32, %v1683_v30  ;;  %v1693_v19 = vsel %vm5371_vm10, %v5279_v3, 0.0  ;;  %v352_v3 = vand.u32 15, %v322_v24 }
 0x260   : > { %v4577_v37 = vpop.f32.mrb[26].mxu1  ;;  %vm5401_vm13 = vcmp.le.s32.totalorder %v352_v3, 14 }
 0x261   : > { %v5333_v39 = vadd.f32 %v4577_v37, %v4545_v57  ;;  %v1880_v40 = vpop.f32.mrb[27].mxu1 }
 0x262   : > { %v5340_v44 = vadd.f32 %v1880_v40, %v1685_v38  ;;  %v326_v40 = vadd.s32 40, %v5281_v4 }
 0x264   : > { %v4580_v45 = vpop.f32.mrb[28].mxu1 }
 0x265   : > { %v5344_v47 = vadd.f32 %v4580_v45, %v4548_v59  ;;  %v1890_v48 = vpop.f32.mrb[29].mxu1 }
 0x266   : > { %v5351_v53 = vadd.f32 %v1890_v48, %v1687_v46  ;;  %v380_v46 = vand.u32 15, %v326_v40  ;;  %v328_v48 = vadd.s32 56, %v5281_v4 }
 0x268   : > { %v4583_v55 = vpop.f32.mrb[30].mxu1  ;;  %vm5423_vm15 = vcmp.le.s32.totalorder %v380_v46, 14 }
 0x269   : > { %v5356_v57 = vadd.f32 %v4583_v55, %v4551_v61  ;;  %v1900_v58 = vpop.f32.mrb[31].mxu1  ;;  %v5882_v55 = vmov 0 }
 0x26a   : > { %v5363_v7 = vadd.f32 %v1900_v58, %v1689_v56 }
 0x26c   : > { %v4586_v54 = vpop.f32.mrb[32].mxu1 }
 0x26d   : > { %v5369_v12 = vadd.f32 %v4586_v54, %v5273_v63  ;;  %v1910_v61 = vpop.f32.mrb[33].mxu1 }
 0x26e   : > { %v5376_v17 = vadd.f32 %v1910_v61, %v1691_v11  ;;  %v5884_v11 = vmov 0 }
 0x26f   : > { %v5885_v11 = vsel %vm5423_vm15, 4294967295, %v5884_v11 }
 0x270   : > { %v4589_v15 = vpop.f32.mrb[34].mxu1 }
 0x271   : > { %v5382_v0 = vadd.f32 %v4589_v15, %v5277_v2  ;;  %v1920_v63 = vpop.f32.mrb[35].mxu1  ;;  %v324_v2 = vadd.s32 24, %v5281_v4 }
 0x272   : > { %v5384_v22 = vadd.f32 %v1920_v63, %v1693_v19 }
 0x273   : > { %v366_v42 = vand.u32 15, %v324_v2 }
 0x274   : > { %v4592_v26 = vpop.f32.mrb[36].mxu1 }
 0x275   : > { %v5389_v29 = vadd.f32 %v4592_v26, %v5283_v5  ;;  %v1930_v30 = vpop.f32.mrb[37].mxu1  ;;  %vm5415_vm14 = vcmp.le.s32.totalorder %v366_v42, 14 }
 0x276   : > { %v5391_v32 = vadd.f32 %v1930_v30, %v1695_v27  ;;  %v5883_v55 = vsel %vm5415_vm14, 4294967295, %v5882_v55  ;;  %v5886_v27 = vmov 0 }
 0x278   : > { %v4595_v34 = vpop.f32.mrb[38].mxu1 }
 0x279   : > { %v5396_v37 = vadd.f32 %v4595_v34, %v5289_v8  ;;  %v1940_v38 = vpop.f32.mrb[39].mxu1 }
 0x27a   : > { %v5399_v6 = vadd.f32 %v1940_v38, %v1697_v35 }
 0x27c   : > { %v4600_v43 = vpop.f32.mrb[40].mxu1 }
 0x27d   : > { %v2260_v45 = vsel %vm5401_vm13, %v4600_v43, 0.0  ;;  %v2120_v8 = vpop.f32.mrb[41].mxu1 }
 0x27e   : > { %v2280_v50 = vadd.f32 %v2260_v45, %v5300_v16  ;;  %v2279_v52 = vadd.f32 %v2120_v8, %v5307_v20  ;;  %v394_v16 = vand.u32 15, %v328_v48  ;;  %v330_v20 = vadd.s32 72, %v5281_v4 }
 0x27f   : > { %v5888_v45 = vmov 0 }
 0x280   : > { %v2308_v56 = vadd.f32 %v5410_v9, %v2280_v50  ;;  %v2307_v58 = vadd.f32 %v5410_v9, %v2279_v52  ;;  %v4603_v60 = vpop.f32.mrb[42].mxu1  ;;  %vm5436_vm11 = vcmp.le.s32.totalorder %v394_v16, 14 }
 0x281   : > { %v2262_v1 = vsel %vm5415_vm14, %v4603_v60, 0.0  ;;  %v2130_v54 = vpop.f32.mrb[43].mxu1  ;;  %v5887_v27 = vsel %vm5436_vm11, 4294967295, %v5886_v27 }
 0x282   : > { %v2328_v61 = vmax.f32 %v2308_v56, 0.0  ;;  %v2327_v13 = vmax.f32 %v2307_v58, 0.0  ;;  %v2282_v14 = vadd.f32 %v2262_v1, %v5311_v23  ;;  %v2281_v15 = vadd.f32 %v2130_v54, %v5318_v28 }
 0x283   : > { %v408_v23 = vand.u32 15, %v330_v20  ;;  %v332_v28 = vadd.s32 88, %v5281_v4  ;;  %v5890_v54 = vmov 0 }
 0x284   : > { %2348 = vst.msk [vmem:[#allocation4 + $0x8] sm:$0xff] %vm279_vm1, %v2328_v61  ;;  %2347 = vst.msk [vmem:[#allocation4] sm:$0xff] %vm279_vm1, %v2327_v13  ;;  %v2310_v19 = vadd.f32 %v5410_v9, %v2282_v14  ;;  %v2309_v63 = vadd.f32 %v5410_v9, %v2281_v15  ;;  %v4606_v21 = vpop.f32.mrb[44].mxu1 }
 0x285   : > { %v2264_v24 = vsel %vm5423_vm15, %v4606_v21, 0.0  ;;  %v2140_v26 = vpop.f32.mrb[45].mxu1  ;;  %vm5449_vm12 = vcmp.le.s32.totalorder %v408_v23, 14 }
 0x286   : > { %v2330_v30 = vmax.f32 %v2310_v19, 0.0  ;;  %v2329_v3 = vmax.f32 %v2309_v63, 0.0  ;;  %v2284_v2 = vadd.f32 %v2264_v24, %v5322_v31  ;;  %v2283_v34 = vadd.f32 %v2140_v26, %v5329_v36 }
 0x287   : > { %v5889_v45 = vsel %vm5449_vm12, 4294967295, %v5888_v45  ;;  %v422_v31 = vand.u32 15, %v332_v28  ;;  %v334_v36 = vadd.s32 104, %v5281_v4  ;;  %v5892_v24 = vmov 0 }
 0x288   : > { %2350 = vst.msk [vmem:[#allocation4 + $0x18] sm:$0xff] %vm279_vm1, %v2330_v30  ;;  %2349 = vst.msk [vmem:[#allocation4 + $0x10] sm:$0xff] %vm279_vm1, %v2329_v3  ;;  %v2312_v35 = vadd.f32 %v5410_v9, %v2284_v2  ;;  %v2311_v38 = vadd.f32 %v5410_v9, %v2283_v34  ;;  %v4609_v40 = vpop.f32.mrb[46].mxu1 }
 0x289   : > { %v2266_v42 = vsel %vm5436_vm11, %v4609_v40, 0.0  ;;  %v2150_v43 = vpop.f32.mrb[47].mxu1  ;;  %vm5462_vm0 = vcmp.le.s32.totalorder %v422_v31, 14  ;;  %v5894_v40 = vmov 0 }
 0x28a   : > { %v2332_v8 = vmax.f32 %v2312_v35, 0.0  ;;  %v2331_v46 = vmax.f32 %v2311_v38, 0.0  ;;  %v2286_v48 = vadd.f32 %v2266_v42, %v5333_v39  ;;  %v2285_v50 = vadd.f32 %v2150_v43, %v5340_v44 }
 0x28b   : > { %v5891_v54 = vsel %vm5462_vm0, 4294967295, %v5890_v54  ;;  %v436_v39 = vand.u32 15, %v334_v36  ;;  %v336_v44 = vadd.s32 120, %v5281_v4 }
 0x28c   : > { %2352 = vst.msk [vmem:[#allocation4 + $0x28] sm:$0xff] %vm279_vm1, %v2332_v8  ;;  %2351 = vst.msk [vmem:[#allocation4 + $0x20] sm:$0xff] %vm279_vm1, %v2331_v46  ;;  %v2314_v52 = vadd.f32 %v5410_v9, %v2286_v48  ;;  %v2313_v56 = vadd.f32 %v5410_v9, %v2285_v50  ;;  %v4612_v58 = vpop.f32.mrb[48].mxu1 }
 0x28d   : > { %v2268_v60 = vsel %vm5449_vm12, %v4612_v58, 0.0  ;;  %v2160_v1 = vpop.f32.mrb[49].mxu1  ;;  %vm5475_vm2 = vcmp.le.s32.totalorder %v436_v39, 14 }
 0x28e   : > { %v2334_v16 = vmax.f32 %v2314_v52, 0.0  ;;  %v2333_v20 = vmax.f32 %v2313_v56, 0.0  ;;  %v2288_v61 = vadd.f32 %v2268_v60, %v5344_v47  ;;  %v2287_v13 = vadd.f32 %v2160_v1, %v5351_v53 }
 0x28f   : > { %v5893_v24 = vsel %vm5475_vm2, 4294967295, %v5892_v24  ;;  %v450_v47 = vand.u32 15, %v336_v44  ;;  %v338_v53 = vadd.s32 136, %v5281_v4 }
 0x290   : > { %2354 = vst.msk [vmem:[#allocation4 + $0x38] sm:$0xff] %vm279_vm1, %v2334_v16  ;;  %2353 = vst.msk [vmem:[#allocation4 + $0x30] sm:$0xff] %vm279_vm1, %v2333_v20  ;;  %v2316_v14 = vadd.f32 %v5410_v9, %v2288_v61  ;;  %v2315_v15 = vadd.f32 %v5410_v9, %v2287_v13  ;;  %v4615_v19 = vpop.f32.mrb[50].mxu1 }
 0x291   : > { %v2270_v63 = vsel %vm5462_vm0, %v4615_v19, 0.0  ;;  %v2170_v21 = vpop.f32.mrb[51].mxu1  ;;  %vm5488_vm0 = vcmp.le.s32.totalorder %v450_v47, 14 }
 0x292   : > { %v2336_v26 = vmax.f32 %v2316_v14, 0.0  ;;  %v2335_v23 = vmax.f32 %v2315_v15, 0.0  ;;  %v2290_v28 = vadd.f32 %v2270_v63, %v5356_v57  ;;  %v2289_v30 = vadd.f32 %v2170_v21, %v5363_v7 }
 0x293   : > { %v5895_v40 = vsel %vm5488_vm0, 4294967295, %v5894_v40  ;;  %v464_v57 = vand.u32 15, %v338_v53  ;;  %v340_v7 = vadd.s32 152, %v5281_v4 }
 0x294   : > { %2356 = vst.msk [vmem:[#allocation4 + $0x48] sm:$0xff] %vm279_vm1, %v2336_v26  ;;  %2355 = vst.msk [vmem:[#allocation4 + $0x40] sm:$0xff] %vm279_vm1, %v2335_v23  ;;  %v2318_v3 = vadd.f32 %v5410_v9, %v2290_v28  ;;  %v2317_v2 = vadd.f32 %v5410_v9, %v2289_v30  ;;  %v4618_v34 = vpop.f32.mrb[52].mxu1 }
 0x295   : > { %v2272_v35 = vsel %vm5475_vm2, %v4618_v34, 0.0  ;;  %v2180_v38 = vpop.f32.mrb[53].mxu1  ;;  %vm5501_vm2 = vcmp.le.s32.totalorder %v464_v57, 14 }
 0x296   : > { %v2338_v42 = vmax.f32 %v2318_v3, 0.0  ;;  %v2337_v43 = vmax.f32 %v2317_v2, 0.0  ;;  %v2292_v31 = vadd.f32 %v2272_v35, %v5369_v12  ;;  %v2291_v36 = vadd.f32 %v2180_v38, %v5376_v17 }
 0x297   : > { %v478_v12 = vand.u32 15, %v340_v7 }
 0x298   : > { %2358 = vst.msk [vmem:[#allocation4 + $0x58] sm:$0xff] %vm279_vm1, %v2338_v42  ;;  %2357 = vst.msk [vmem:[#allocation4 + $0x50] sm:$0xff] %vm279_vm1, %v2337_v43  ;;  %v2320_v8 = vadd.f32 %v5410_v9, %v2292_v31  ;;  %v2319_v46 = vadd.f32 %v5410_v9, %v2291_v36  ;;  %v4621_v48 = vpop.f32.mrb[54].mxu1 }
 0x299   : > { %v2274_v50 = vsel %vm5488_vm0, %v4621_v48, 0.0  ;;  %v2190_v52 = vpop.f32.mrb[55].mxu1  ;;  %vm620_vm0 = vcmp.le.s32.totalorder %v478_v12, 14 }
 0x29a   : > { %v2340_v56 = vmax.f32 %v2320_v8, 0.0  ;;  %v2339_v17 = vmax.f32 %v2319_v46, 0.0  ;;  %v2294_v58 = vadd.f32 %v2274_v50, %v5382_v0  ;;  %v2293_v60 = vadd.f32 %v2190_v52, %v5384_v22 }
 0x29c   : > { %2360 = vst.msk [vmem:[#allocation4 + $0x68] sm:$0xff] %vm279_vm1, %v2340_v56  ;;  %2359 = vst.msk [vmem:[#allocation4 + $0x60] sm:$0xff] %vm279_vm1, %v2339_v17  ;;  %v2322_v1 = vadd.f32 %v5410_v9, %v2294_v58  ;;  %v2321_v39 = vadd.f32 %v5410_v9, %v2293_v60  ;;  %v4624_v44 = vpop.f32.mrb[56].mxu1 }
 0x29d   : > { %v2276_v16 = vsel %vm5501_vm2, %v4624_v44, 0.0  ;;  %v2200_v20 = vpop.f32.mrb[57].mxu1 }
 0x29e   : > { %v2342_v61 = vmax.f32 %v2322_v1, 0.0  ;;  %v2341_v13 = vmax.f32 %v2321_v39, 0.0  ;;  %v2296_v0 = vadd.f32 %v2276_v16, %v5389_v29  ;;  %v2295_v22 = vadd.f32 %v2200_v20, %v5391_v32 }
 0x2a0   : > { %2362 = vst.msk [vmem:[#allocation4 + $0x78] sm:$0xff] %vm279_vm1, %v2342_v61  ;;  %2361 = vst.msk [vmem:[#allocation4 + $0x70] sm:$0xff] %vm279_vm1, %v2341_v13  ;;  %v2324_v14 = vadd.f32 %v5410_v9, %v2296_v0  ;;  %v2323_v15 = vadd.f32 %v5410_v9, %v2295_v22  ;;  %v4627_v19 = vpop.f32.mrb[58].mxu1 }
 0x2a1   : > { %v2278_v63 = vsel %vm620_vm0, %v4627_v19, 0.0  ;;  %v2210_v21 = vpop.f32.mrb[59].mxu1 }
 0x2a2   : > { %v2344_v47 = vmax.f32 %v2324_v14, 0.0  ;;  %v2343_v53 = vmax.f32 %v2323_v15, 0.0  ;;  %v2298_v26 = vadd.f32 %v2278_v63, %v5396_v37  ;;  %v2297_v23 = vadd.f32 %v2210_v21, %v5399_v6  ;;  %2370 = sbr.rel (%p4092_p8) target bundleno = 681 (0x2a9), region = 40 }
 0x2a3   : > { %v4940_v37 = vmov (!%p4092_p8), 0.0  }
 0x2a4   : > { %2364 = vst.msk [vmem:[#allocation4 + $0x88] sm:$0xff] %vm279_vm1, %v2344_v47  ;;  %2363 = vst.msk [vmem:[#allocation4 + $0x80] sm:$0xff] %vm279_vm1, %v2343_v53  ;;  %v2326_v29 = vadd.f32 %v5410_v9, %v2298_v26  ;;  %v2325_v32 = vadd.f32 %v5410_v9, %v2297_v23 }
 0x2a5   : > { %2371 = vst.msk [vmem:[#allocation4] sm:$0xff] (!%p4092_p8), %vm279_vm1, %v4940_v37  ;;  %2372 = vst.msk [vmem:[#allocation4 + $0x8] sm:$0xff] (!%p4092_p8), %vm279_vm1, %v4940_v37 }
 0x2a6   : > { %v2346_v28 = vmax.f32 %v2326_v29, 0.0  ;;  %v2345_v30 = vmax.f32 %v2325_v32, 0.0 }
 0x2a8   : > { %2366 = vst.msk [vmem:[#allocation4 + $0x98] sm:$0xff] %vm279_vm1, %v2346_v28  ;;  %2365 = vst.msk [vmem:[#allocation4 + $0x90] sm:$0xff] %vm279_vm1, %v2345_v30 }
 0x2a9 PF: > { %p4093_p9 = scmp.ne.s32.totalorder %s4921_s15, 1 }
 0x2aa   : > { %v4941_v6 = vmov (!%p4093_p9), 0.0  }
 0x2ab   : > { %2376 = sbr.rel (%p4093_p9) target bundleno = 690 (0x2b2), region = 44  ;;  %2377 = vst.msk [vmem:[#allocation4 + $0x90] sm:$0xff] (!%p4093_p9), %vm279_vm1, %v4941_v6  ;;  %2378 = vst.msk [vmem:[#allocation4 + $0x98] sm:$0xff] (!%p4093_p9), %vm279_vm1, %v4941_v6 }
 0x2b2 PF: > { %v4095_v9 = vld [vmem:[%s5852_s2 + $0x1c] sm:$0xf]  ;;  %v2382_v2 = vld [vmem:[#allocation4 + $0x18] sm:$0xff]  ;;  %vm5898_vm0 = vcmask 24576   ;;  %vm5900_vm12 = vcmask 1043456   ;;  %v2383_v35 = vld [vmem:[#allocation4 + $0x20] sm:$0xff] }
 0x2b3   : > { %v2381_v3 = vld [vmem:[#allocation4 + $0x10] sm:$0xff]  ;;  %3021 = vst.msk [vmem:[#allocation5] sm:$0x1] %vm5898_vm0, %v4939_v51  ;;  %vm5899_vm2 = vmmov %vm5898_vm0  ;;  %4628 = vmatprep.subr.msk.mxu0 %vm5900_vm12, %v4095_v9  ;;  %v4130_v57 = vld [vmem:[%s5852_s2 + $0x20] sm:$0xf] }
 0x2b4   : > { %3022 = vst.msk [vmem:[#allocation5 + $0x81] sm:$0x1] %vm5899_vm2, %v4939_v51  ;;  %4630 = vmatprep.mubr.msk.f32.mxu0 %vm279_vm1, %v2381_v3  ;;  %v4094_v34 = vld [vmem:[%s5852_s2 + $0x18] sm:$0xf]  ;;  %vm5901_vm11 = vmmov %vm5900_vm12  ;;  %v2384_v51 = vld [vmem:[#allocation4 + $0x28] sm:$0xff] }
 0x2b5   : > { %4629 = vmatpush3.msk.msra.mxu0 %vm5901_vm11, %v4095_v9  ;;  %vm5902_vm15 = vmmov %vm5901_vm11  ;;  %v2385_v38 = vld [vmem:[#allocation4 + $0x30] sm:$0xff]  ;;  %v2386_v7 = vld [vmem:[#allocation4 + $0x38] sm:$0xff] }
 0x2b6   : > { %4631 = vmatmul.mubr.msk.f32.vlgmr.msra.gmra.mrb[20].mxu0 %vm279_vm1, %v2382_v2  ;;  %4654 = vmatprep.subr.msk.mxu0 %vm5902_vm15, %v4094_v34  ;;  %vm5903_vm14 = vmmov %vm5901_vm11  ;;  %v2387_v42 = vld [vmem:[#allocation4 + $0x40] sm:$0xff]  ;;  %v2388_v43 = vld [vmem:[#allocation4 + $0x48] sm:$0xff] }
 0x2b7   : > { %4655 = vmatpush3.msk.msra.mxu0 %vm5903_vm14, %v4094_v34  ;;  %4633 = vmatprep.mubr.msk.f32.mxu0 %vm279_vm1, %v2383_v35  ;;  %vm5904_vm12 = vmmov %vm5901_vm11  ;;  %v2389_v31 = vld [vmem:[#allocation4 + $0x50] sm:$0xff]  ;;  %v2390_v36 = vld [vmem:[#allocation4 + $0x58] sm:$0xff] }
 0x2b8   : > { %4680 = vmatprep.subr.msk.mxu0 %vm5904_vm12, %v4130_v57  ;;  %v2391_v8 = vld [vmem:[#allocation4 + $0x60] sm:$0xff]  ;;  %v2392_v46 = vld [vmem:[#allocation4 + $0x68] sm:$0xff]  ;;  %v2393_v48 = vld [vmem:[#allocation4 + $0x70] sm:$0xff] }
 0x2b9   : > { %v2394_v50 = vld [vmem:[#allocation4 + $0x78] sm:$0xff]  ;;  %v2397_v52 = vld [vmem:[#allocation4 + $0x80] sm:$0xff]  ;;  %v2398_v4 = vld [vmem:[#allocation4 + $0x88] sm:$0xff] }
 0x2ba   : > { %4634 = vmatmul.mubr.msk.f32.gmra.mrb[22].mxu0 %vm279_vm1, %v2384_v51  ;;  %v2379_v12 = vld [vmem:[#allocation4] sm:$0xff]  ;;  %v2380_v56 = vld [vmem:[#allocation4 + $0x8] sm:$0xff]  ;;  %vm5905_vm14 = vmmov %vm5901_vm11 }
 0x2bb   : > { %4636 = vmatprep.mubr.msk.f32.mxu0 %vm279_vm1, %v2385_v38  ;;  %v2765_v17 = vld [vmem:[#allocation4 + $0x90] sm:$0xff]  ;;  %v2766_v58 = vld [vmem:[#allocation4 + $0x98] sm:$0xff]  ;;  %vm5906_vm15 = vmmov %vm5901_vm11 }
 0x2bc   : > { %v4150_v60 = vld [vmem:[%s5852_s2 + $0x24] sm:$0xf]  ;;  %v4168_v1 = vld [vmem:[%s5852_s2 + $0x28] sm:$0xf]  ;;  %vm5907_vm0 = vmmov %vm5901_vm11 }
 0x2bd   : > { %4706 = vmatprep.subr.msk.mxu1 %vm5906_vm15, %v4150_v60  ;;  %v5612_v39 = vld [vmem:[%s5853_s3 + $0x2] ss:$0 sm:$0xff]  ;;  %vm5908_vm2 = vmmov %vm5907_vm0 }
 0x2be   : > { %4637 = vmatmul.mubr.msk.f32.gmra.mrb[24].mxu0 %vm279_vm1, %v2386_v7  ;;  %4707 = vmatpush3.msk.msra.mxu1 %vm5901_vm11, %v4150_v60  ;;  %vm5909_vm12 = vmmov %vm5907_vm0 }
 0x2bf   : > { %4639 = vmatprep.mubr.msk.f32.mxu0 %vm279_vm1, %v2387_v42  ;;  %4732 = vmatprep.subr.msk.mxu1 %vm5907_vm0, %v4168_v1 }
 0x2c2   : > { %4640 = vmatmul.mubr.msk.f32.gmra.mrb[26].mxu0 %vm279_vm1, %v2388_v43 }
 0x2c3   : > { %4642 = vmatprep.mubr.msk.f32.mxu0 %vm279_vm1, %v2389_v31 }
 0x2c6   : > { %4643 = vmatmul.mubr.msk.f32.gmra.mrb[28].mxu0 %vm279_vm1, %v2390_v36 }
 0x2c7   : > { %4645 = vmatprep.mubr.msk.f32.mxu0 %vm279_vm1, %v2391_v8 }
 0x2ca   : > { %4646 = vmatmul.mubr.msk.f32.gmra.mrb[30].mxu0 %vm279_vm1, %v2392_v46 }
 0x2cb   : > { %4648 = vmatprep.mubr.msk.f32.mxu0 %vm279_vm1, %v2393_v48 }
 0x2ce   : > { %4649 = vmatmul.mubr.msk.f32.gmra.mrb[32].mxu0 %vm279_vm1, %v2394_v50 }
 0x2cf   : > { %4651 = vmatprep.mubr.msk.f32.mxu0 %vm279_vm1, %v2397_v52 }
 0x2d2   : > { %4652 = vmatmul.mubr.msk.f32.gmra.mrb[34].mxu0 %vm279_vm1, %v2398_v4 }
 0x2d3   : > { %4656 = vmatprep.mubr.msk.f32.mxu0 %vm279_vm1, %v2379_v12 }
 0x2d6   : > { %4657 = vmatmul.mubr.msk.f32.vlgmr.msra.gmra.mrb[20].mxu0 %vm279_vm1, %v2380_v56 }
 0x2d7   : > { %4681 = vmatpush3.msk.msra.mxu0 %vm5905_vm14, %v4130_v57  ;;  %4659 = vmatprep.mubr.msk.f32.mxu0 %vm279_vm1, %v2381_v3  ;;  %vm5910_vm14 = vmmov %vm5907_vm0 }
 0x2da   : > { %4660 = vmatmul.mubr.msk.f32.gmra.mrb[22].mxu0 %vm279_vm1, %v2382_v2  ;;  %v5632_v2 = vld [vmem:[%s5852_s2 + $0x2c] sm:$0xf] }
 0x2db   : > { %4662 = vmatprep.mubr.msk.f32.mxu0 %vm279_vm1, %v2383_v35 }
 0x2de   : > { %4663 = vmatmul.mubr.msk.f32.gmra.mrb[24].mxu0 %vm279_vm1, %v2384_v51 }
 0x2df   : > { %4665 = vmatprep.mubr.msk.f32.mxu0 %vm279_vm1, %v2385_v38 }
 0x2e2   : > { %4666 = vmatmul.mubr.msk.f32.gmra.mrb[26].mxu0 %vm279_vm1, %v2386_v7 }
 0x2e3   : > { %4668 = vmatprep.mubr.msk.f32.mxu0 %vm279_vm1, %v2387_v42 }
 0x2e6   : > { %4669 = vmatmul.mubr.msk.f32.gmra.mrb[28].mxu0 %vm279_vm1, %v2388_v43 }
 0x2e7   : > { %4671 = vmatprep.mubr.msk.f32.mxu0 %vm279_vm1, %v2389_v31 }
 0x2ea   : > { %4672 = vmatmul.mubr.msk.f32.gmra.mrb[30].mxu0 %vm279_vm1, %v2390_v36 }
 0x2eb   : > { %4674 = vmatprep.mubr.msk.f32.mxu0 %vm279_vm1, %v2391_v8 }
 0x2ee   : > { %4675 = vmatmul.mubr.msk.f32.gmra.mrb[32].mxu0 %vm279_vm1, %v2392_v46 }
 0x2ef   : > { %4677 = vmatprep.mubr.msk.f32.mxu0 %vm279_vm1, %v2393_v48 }
 0x2f2   : > { %4678 = vmatmul.mubr.msk.f32.gmra.mrb[34].mxu0 %vm279_vm1, %v2394_v50 }
 0x2f3   : > { %4682 = vmatprep.mubr.msk.f32.mxu0 %vm279_vm1, %v2383_v35 }
 0x2f6   : > { %4683 = vmatmul.mubr.msk.f32.vlgmr.msra.gmra.mrb[20].mxu0 %vm279_vm1, %v2384_v51 }
 0x2f7   : > { %4685 = vmatprep.mubr.msk.f32.mxu0 %vm279_vm1, %v2385_v38 }
 0x2fa   : > { %4686 = vmatmul.mubr.msk.f32.gmra.mrb[22].mxu0 %vm279_vm1, %v2386_v7 }
 0x2fb   : > { %4688 = vmatprep.mubr.msk.f32.mxu0 %vm279_vm1, %v2387_v42 }
 0x2fe   : > { %4689 = vmatmul.mubr.msk.f32.gmra.mrb[24].mxu0 %vm279_vm1, %v2388_v43 }
 0x2ff   : > { %4691 = vmatprep.mubr.msk.f32.mxu0 %vm279_vm1, %v2389_v31 }
 0x302   : > { %4692 = vmatmul.mubr.msk.f32.gmra.mrb[26].mxu0 %vm279_vm1, %v2390_v36 }
 0x303   : > { %4694 = vmatprep.mubr.msk.f32.mxu0 %vm279_vm1, %v2391_v8 }
 0x306   : > { %4695 = vmatmul.mubr.msk.f32.gmra.mrb[28].mxu0 %vm279_vm1, %v2392_v46 }
 0x307   : > { %4697 = vmatprep.mubr.msk.f32.mxu0 %vm279_vm1, %v2393_v48 }
 0x30a   : > { %4698 = vmatmul.mubr.msk.f32.gmra.mrb[30].mxu0 %vm279_vm1, %v2394_v50 }
 0x30b   : > { %4700 = vmatprep.mubr.msk.f32.mxu0 %vm279_vm1, %v2397_v52 }
 0x30e   : > { %4701 = vmatmul.mubr.msk.f32.gmra.mrb[32].mxu0 %vm279_vm1, %v2398_v4 }
 0x30f   : > { %4703 = vmatprep.mubr.msk.f32.mxu0 %vm279_vm1, %v2765_v17 }
 0x312   : > { %4704 = vmatmul.mubr.msk.f32.gmra.mrb[34].mxu0 %vm279_vm1, %v2766_v58 }
 0x3c9   : > { %v4684_v44 = vpop.f32.mrb[20].mxu0 }
 0x3ca   : > { %v2990_v16 = vadd.f32 %v4684_v44, %v5612_v39  ;;  %v2886_v20 = vpop.f32.mrb[21].mxu0 }
 0x3cb   : > { %v2989_v61 = vadd.f32 %v5612_v39, %v2886_v20 }
 0x3cc   : > { %v3006_v13 = vmax.f32 %v2990_v16, 0.0 }
 0x3cd   : > { %v3005_v0 = vmax.f32 %v2989_v61, 0.0  ;;  %v4687_v22 = vpop.f32.mrb[22].mxu0 }
 0x3ce   : > { %3024 = vst.msk [vmem:[#allocation5 + $0x9] sm:$0xff] %vm279_vm1, %v3006_v13  ;;  %v2992_v14 = vadd.f32 %v4687_v22, %v5612_v39  ;;  %v2896_v15 = vpop.f32.mrb[23].mxu0 }
 0x3cf   : > { %3023 = vst.msk [vmem:[#allocation5 + $0x1] sm:$0xff] %vm279_vm1, %v3005_v0  ;;  %v2991_v19 = vadd.f32 %v5612_v39, %v2896_v15 }
 0x3d0   : > { %v3008_v63 = vmax.f32 %v2992_v14, 0.0 }
 0x3d1   : > { %v3007_v21 = vmax.f32 %v2991_v19, 0.0  ;;  %v4690_v47 = vpop.f32.mrb[24].mxu0 }
 0x3d2   : > { %3026 = vst.msk [vmem:[#allocation5 + $0x19] sm:$0xff] %vm279_vm1, %v3008_v63  ;;  %v2994_v53 = vadd.f32 %v4690_v47, %v5612_v39  ;;  %v2906_v26 = vpop.f32.mrb[25].mxu0 }
 0x3d3   : > { %3025 = vst.msk [vmem:[#allocation5 + $0x11] sm:$0xff] %vm279_vm1, %v3007_v21  ;;  %v2993_v23 = vadd.f32 %v5612_v39, %v2906_v26 }
 0x3d4   : > { %v3010_v29 = vmax.f32 %v2994_v53, 0.0 }
 0x3d5   : > { %v3009_v32 = vmax.f32 %v2993_v23, 0.0  ;;  %v4693_v28 = vpop.f32.mrb[26].mxu0 }
 0x3d6   : > { %3028 = vst.msk [vmem:[#allocation5 + $0x29] sm:$0xff] %vm279_vm1, %v3010_v29  ;;  %v2996_v30 = vadd.f32 %v4693_v28, %v5612_v39  ;;  %v2916_v37 = vpop.f32.mrb[27].mxu0  ;;  %v3039_v6 = vld [vmem:[#allocation5] sm:$0xff]  ;;  %v3040_v9 = vld [vmem:[#allocation5 + $0x8] sm:$0xff] }
 0x3d7   : > { %3027 = vst.msk [vmem:[#allocation5 + $0x21] sm:$0xff] %vm279_vm1, %v3009_v32  ;;  %v2995_v3 = vadd.f32 %v5612_v39, %v2916_v37  ;;  %4708 = vmatprep.mubr.msk.f32.mxu1 %vm279_vm1, %v3039_v6  ;;  %v3269_v32 = vld [vmem:[#allocation5 + $0x1] sm:$0xff]  ;;  %v3270_v28 = vld [vmem:[#allocation5 + $0x9] sm:$0xff] }
 0x3d8   : > { %v3012_v34 = vmax.f32 %v2996_v30, 0.0  ;;  %4709 = vmatmul.mubr.msk.f32.vlgmr.msra.gmra.mrb[60].mxu1 %vm279_vm1, %v3040_v9 }
 0x3d9   : > { %v3011_v35 = vmax.f32 %v2995_v3, 0.0  ;;  %v4696_v51 = vpop.f32.mrb[28].mxu0  ;;  %4733 = vmatpush3.msk.msra.mxu1 %vm5908_vm2, %v4168_v1  ;;  %v3272_v37 = vld [vmem:[#allocation5 + $0x19] sm:$0xff] }
 0x3da   : > { %3030 = vst.msk [vmem:[#allocation5 + $0x39] sm:$0xff] %vm279_vm1, %v3012_v34  ;;  %v2998_v38 = vadd.f32 %v4696_v51, %v5612_v39  ;;  %v2926_v57 = vpop.f32.mrb[29].mxu0  ;;  %v3041_v7 = vld [vmem:[#allocation5 + $0x10] sm:$0xff]  ;;  %v3042_v42 = vld [vmem:[#allocation5 + $0x18] sm:$0xff]  ;;  %4758 = vmatprep.subr.msk.mxu1 %vm5909_vm12, %v5632_v2 }
 0x3db   : > { %3029 = vst.msk [vmem:[#allocation5 + $0x31] sm:$0xff] %vm279_vm1, %v3011_v35  ;;  %v2997_v43 = vadd.f32 %v5612_v39, %v2926_v57  ;;  %4711 = vmatprep.mubr.msk.f32.mxu1 %vm279_vm1, %v3041_v7  ;;  %v3271_v30 = vld [vmem:[#allocation5 + $0x11] sm:$0xff] }
 0x3dc   : > { %v3014_v31 = vmax.f32 %v2998_v38, 0.0  ;;  %4712 = vmatmul.mubr.msk.f32.gmra.mrb[62].mxu1 %vm279_vm1, %v3042_v42 }
 0x3dd   : > { %v3013_v36 = vmax.f32 %v2997_v43, 0.0  ;;  %v4699_v8 = vpop.f32.mrb[30].mxu0  ;;  %v3274_v9 = vld [vmem:[#allocation5 + $0x29] sm:$0xff] }
 0x3de   : > { %3032 = vst.msk [vmem:[#allocation5 + $0x49] sm:$0xff] %vm279_vm1, %v3014_v31  ;;  %v3000_v46 = vadd.f32 %v4699_v8, %v5612_v39  ;;  %v2936_v48 = vpop.f32.mrb[31].mxu0  ;;  %v3043_v50 = vld [vmem:[#allocation5 + $0x20] sm:$0xff]  ;;  %v3044_v52 = vld [vmem:[#allocation5 + $0x28] sm:$0xff]  ;;  %v3501_v8 = vld [vmem:[#allocation5 + $0x12] sm:$0xff] }
 0x3df   : > { %3031 = vst.msk [vmem:[#allocation5 + $0x41] sm:$0xff] %vm279_vm1, %v3013_v36  ;;  %v2999_v4 = vadd.f32 %v5612_v39, %v2936_v48  ;;  %4714 = vmatprep.mubr.msk.f32.mxu1 %vm279_vm1, %v3043_v50  ;;  %v3273_v6 = vld [vmem:[#allocation5 + $0x21] sm:$0xff]  ;;  %v3500_v36 = vld [vmem:[#allocation5 + $0xa] sm:$0xff] }
 0x3e0   : > { %v3016_v12 = vmax.f32 %v3000_v46, 0.0  ;;  %4715 = vmatmul.mubr.msk.f32.gmra.mrb[64].mxu1 %vm279_vm1, %v3044_v52  ;;  %v3499_v31 = vld [vmem:[#allocation5 + $0x2] sm:$0xff]  ;;  %v3502_v46 = vld [vmem:[#allocation5 + $0x1a] sm:$0xff] }
 0x3e1   : > { %v3015_v56 = vmax.f32 %v2999_v4, 0.0  ;;  %v4702_v17 = vpop.f32.mrb[32].mxu0  ;;  %v3276_v34 = vld [vmem:[#allocation5 + $0x39] sm:$0xff]  ;;  %v3503_v48 = vld [vmem:[#allocation5 + $0x22] sm:$0xff] }
 0x3e2   : > { %3034 = vst.msk [vmem:[#allocation5 + $0x59] sm:$0xff] %vm279_vm1, %v3016_v12  ;;  %v3002_v58 = vadd.f32 %v4702_v17, %v5612_v39  ;;  %v2946_v60 = vpop.f32.mrb[33].mxu0  ;;  %v3045_v1 = vld [vmem:[#allocation5 + $0x30] sm:$0xff]  ;;  %v3046_v44 = vld [vmem:[#allocation5 + $0x38] sm:$0xff] }
 0x3e3   : > { %3033 = vst.msk [vmem:[#allocation5 + $0x51] sm:$0xff] %vm279_vm1, %v3015_v56  ;;  %v3001_v16 = vadd.f32 %v5612_v39, %v2946_v60  ;;  %4717 = vmatprep.mubr.msk.f32.mxu1 %vm279_vm1, %v3045_v1  ;;  %v3275_v3 = vld [vmem:[#allocation5 + $0x31] sm:$0xff] }
 0x3e4   : > { %v3018_v20 = vmax.f32 %v3002_v58, 0.0  ;;  %4718 = vmatmul.mubr.msk.f32.gmra.mrb[66].mxu1 %vm279_vm1, %v3046_v44  ;;  %v3504_v50 = vld [vmem:[#allocation5 + $0x2a] sm:$0xff]  ;;  %v3505_v52 = vld [vmem:[#allocation5 + $0x32] sm:$0xff] }
 0x3e5   : > { %v3017_v61 = vmax.f32 %v3001_v16, 0.0  ;;  %v4705_v13 = vpop.f32.mrb[34].mxu0  ;;  %v3278_v51 = vld [vmem:[#allocation5 + $0x49] sm:$0xff] }
 0x3e6   : > { %3036 = vst.msk [vmem:[#allocation5 + $0x69] sm:$0xff] %vm279_vm1, %v3018_v20  ;;  %v3004_v0 = vadd.f32 %v4705_v13, %v5612_v39  ;;  %v2956_v22 = vpop.f32.mrb[35].mxu0  ;;  %v3047_v14 = vld [vmem:[#allocation5 + $0x40] sm:$0xff]  ;;  %v3048_v15 = vld [vmem:[#allocation5 + $0x48] sm:$0xff] }
 0x3e7   : > { %3035 = vst.msk [vmem:[#allocation5 + $0x61] sm:$0xff] %vm279_vm1, %v3017_v61  ;;  %v3003_v19 = vadd.f32 %v5612_v39, %v2956_v22  ;;  %4720 = vmatprep.mubr.msk.f32.mxu1 %vm279_vm1, %v3047_v14  ;;  %v3277_v35 = vld [vmem:[#allocation5 + $0x41] sm:$0xff] }
 0x3e8   : > { %v3020_v63 = vmax.f32 %v3004_v0, 0.0  ;;  %4721 = vmatmul.mubr.msk.f32.gmra.mrb[68].mxu1 %vm279_vm1, %v3048_v15  ;;  %v3506_v4 = vld [vmem:[#allocation5 + $0x3a] sm:$0xff]  ;;  %v3507_v12 = vld [vmem:[#allocation5 + $0x42] sm:$0xff] }
 0x3e9   : > { %v3019_v21 = vmax.f32 %v3003_v19, 0.0  ;;  %v3280_v38 = vld [vmem:[#allocation5 + $0x59] sm:$0xff] }
 0x3ea   : > { %3038 = vst.msk [vmem:[#allocation5 + $0x79] sm:$0xff] %vm279_vm1, %v3020_v63  ;;  %v3049_v47 = vld [vmem:[#allocation5 + $0x50] sm:$0xff]  ;;  %v3050_v53 = vld [vmem:[#allocation5 + $0x58] sm:$0xff] }
 0x3eb   : > { %3037 = vst.msk [vmem:[#allocation5 + $0x71] sm:$0xff] %vm279_vm1, %v3019_v21  ;;  %4723 = vmatprep.mubr.msk.f32.mxu1 %vm279_vm1, %v3049_v47  ;;  %v3508_v56 = vld [vmem:[#allocation5 + $0x4a] sm:$0xff]  ;;  %v3509_v17 = vld [vmem:[#allocation5 + $0x52] sm:$0xff] }
 0x3ec   : > { %4724 = vmatmul.mubr.msk.f32.gmra.mrb[70].mxu1 %vm279_vm1, %v3050_v53 }
 0x3ed   : > { %v3282_v7 = vld [vmem:[#allocation5 + $0x69] sm:$0xff] }
 0x3ee   : > { %v3051_v26 = vld [vmem:[#allocation5 + $0x60] sm:$0xff]  ;;  %v3052_v23 = vld [vmem:[#allocation5 + $0x68] sm:$0xff] }
 0x3ef   : > { %4726 = vmatprep.mubr.msk.f32.mxu1 %vm279_vm1, %v3051_v26  ;;  %v3281_v57 = vld [vmem:[#allocation5 + $0x61] sm:$0xff] }
 0x3f0   : > { %4727 = vmatmul.mubr.msk.f32.gmra.mrb[72].mxu1 %vm279_vm1, %v3052_v23  ;;  %v3510_v58 = vld [vmem:[#allocation5 + $0x5a] sm:$0xff]  ;;  %v3511_v60 = vld [vmem:[#allocation5 + $0x62] sm:$0xff] }
 0x3f1   : > { %v3284_v43 = vld [vmem:[#allocation5 + $0x79] sm:$0xff] }
 0x3f2   : > { %v3053_v39 = vld [vmem:[#allocation5 + $0x70] sm:$0xff]  ;;  %v3054_v29 = vld [vmem:[#allocation5 + $0x78] sm:$0xff] }
 0x3f3   : > { %4729 = vmatprep.mubr.msk.f32.mxu1 %vm279_vm1, %v3053_v39  ;;  %v3283_v42 = vld [vmem:[#allocation5 + $0x71] sm:$0xff]  ;;  %v3514_v16 = vld [vmem:[#allocation5 + $0x7a] sm:$0xff] }
 0x3f4   : > { %4730 = vmatmul.mubr.msk.f32.gmra.mrb[74].mxu1 %vm279_vm1, %v3054_v29  ;;  %v3512_v1 = vld [vmem:[#allocation5 + $0x6a] sm:$0xff]  ;;  %v3513_v44 = vld [vmem:[#allocation5 + $0x72] sm:$0xff] }
 0x3f5   : > { %4734 = vmatprep.mubr.msk.f32.mxu1 %vm279_vm1, %v3269_v32 }
 0x3f8   : > { %4735 = vmatmul.mubr.msk.f32.vlgmr.msra.gmra.mrb[76].mxu1 %vm279_vm1, %v3270_v28 }
 0x3f9   : > { %4737 = vmatprep.mubr.msk.f32.mxu1 %vm279_vm1, %v3271_v30  ;;  %4759 = vmatpush3.msk.msra.mxu1 %vm5910_vm14, %v5632_v2  ;;  %v3279_v2 = vld [vmem:[#allocation5 + $0x51] sm:$0xff] }
 0x3fc   : > { %4738 = vmatmul.mubr.msk.f32.gmra.mrb[78].mxu1 %vm279_vm1, %v3272_v37 }
 0x3fd   : > { %4740 = vmatprep.mubr.msk.f32.mxu1 %vm279_vm1, %v3273_v6 }
 0x400   : > { %4741 = vmatmul.mubr.msk.f32.gmra.mrb[80].mxu1 %vm279_vm1, %v3274_v9 }
 0x401   : > { %4743 = vmatprep.mubr.msk.f32.mxu1 %vm279_vm1, %v3275_v3 }
 0x404   : > { %4744 = vmatmul.mubr.msk.f32.gmra.mrb[82].mxu1 %vm279_vm1, %v3276_v34 }
 0x405   : > { %4746 = vmatprep.mubr.msk.f32.mxu1 %vm279_vm1, %v3277_v35 }
 0x408   : > { %4747 = vmatmul.mubr.msk.f32.gmra.mrb[84].mxu1 %vm279_vm1, %v3278_v51 }
 0x409   : > { %4749 = vmatprep.mubr.msk.f32.mxu1 %vm279_vm1, %v3279_v2 }
 0x40c   : > { %4750 = vmatmul.mubr.msk.f32.gmra.mrb[86].mxu1 %vm279_vm1, %v3280_v38 }
 0x40d   : > { %4752 = vmatprep.mubr.msk.f32.mxu1 %vm279_vm1, %v3281_v57 }
 0x410   : > { %4753 = vmatmul.mubr.msk.f32.gmra.mrb[88].mxu1 %vm279_vm1, %v3282_v7 }
 0x411   : > { %4755 = vmatprep.mubr.msk.f32.mxu1 %vm279_vm1, %v3283_v42 }
 0x414   : > { %4756 = vmatmul.mubr.msk.f32.gmra.mrb[90].mxu1 %vm279_vm1, %v3284_v43 }
 0x415   : > { %4760 = vmatprep.mubr.msk.f32.mxu1 %vm279_vm1, %v3499_v31 }
 0x418   : > { %4761 = vmatmul.mubr.msk.f32.vlgmr.msra.gmra.mrb[92].mxu1 %vm279_vm1, %v3500_v36 }
 0x419   : > { %4763 = vmatprep.mubr.msk.f32.mxu1 %vm279_vm1, %v3501_v8 }
 0x41c   : > { %4764 = vmatmul.mubr.msk.f32.gmra.mrb[94].mxu1 %vm279_vm1, %v3502_v46 }
 0x41d   : > { %4766 = vmatprep.mubr.msk.f32.mxu1 %vm279_vm1, %v3503_v48 }
 0x420   : > { %4767 = vmatmul.mubr.msk.f32.gmra.mrb[96].mxu1 %vm279_vm1, %v3504_v50 }
 0x421   : > { %4769 = vmatprep.mubr.msk.f32.mxu1 %vm279_vm1, %v3505_v52 }
 0x424   : > { %4770 = vmatmul.mubr.msk.f32.gmra.mrb[98].mxu1 %vm279_vm1, %v3506_v4 }
 0x425   : > { %4772 = vmatprep.mubr.msk.f32.mxu1 %vm279_vm1, %v3507_v12 }
 0x428   : > { %4773 = vmatmul.mubr.msk.f32.gmra.mrb[100].mxu1 %vm279_vm1, %v3508_v56 }
 0x429   : > { %4775 = vmatprep.mubr.msk.f32.mxu1 %vm279_vm1, %v3509_v17 }
 0x42c   : > { %4776 = vmatmul.mubr.msk.f32.gmra.mrb[102].mxu1 %vm279_vm1, %v3510_v58 }
 0x42d   : > { %4778 = vmatprep.mubr.msk.f32.mxu1 %vm279_vm1, %v3511_v60 }
 0x430   : > { %4779 = vmatmul.mubr.msk.f32.gmra.mrb[104].mxu1 %vm279_vm1, %v3512_v1 }
 0x431   : > { %4781 = vmatprep.mubr.msk.f32.mxu1 %vm279_vm1, %v3513_v44 }
 0x434   : > { %4782 = vmatmul.mubr.msk.f32.gmra.mrb[106].mxu1 %vm279_vm1, %v3514_v16 }
 0x4ab   : > { %v4710_v20 = vpop.f32.mrb[60].mxu1 }
 0x4ac   : > { %v3174_v61 = vpop.f32.mrb[61].mxu1 }
 0x4ad   : > { %v3253_v28 = vsel %vm5293_vm3, %v3174_v61, 0.0  ;;  %vm5911_vm3 = vnez %v5883_v55 }
 0x4af   : > { %v4713_v13 = vpop.f32.mrb[62].mxu1 }
 0x4b0   : > { %v3184_v0 = vpop.f32.mrb[63].mxu1 }
 0x4b1   : > { %v3255_v3 = vsel %vm5302_vm4, %v3184_v0, 0.0  ;;  %v5745_v0 = vld [vmem:[%s5853_s3 + $0x3] ss:$0 sm:$0xff]  ;;  %vm5912_vm4 = vnez %v5885_v11 }
 0x4b3   : > { %v4716_v22 = vpop.f32.mrb[64].mxu1 }
 0x4b4   : > { %v3194_v14 = vpop.f32.mrb[65].mxu1 }
 0x4b5   : > { %v3257_v38 = vsel %vm5313_vm5, %v3194_v14, 0.0  ;;  %vm5913_vm5 = vnez %v5887_v27 }
 0x4b7   : > { %v4719_v15 = vpop.f32.mrb[66].mxu1 }
 0x4b8   : > { %v3204_v19 = vpop.f32.mrb[67].mxu1 }
 0x4b9   : > { %v3259_v10 = vsel %vm5324_vm6, %v3204_v19, 0.0  ;;  %v3769_v19 = vld [vmem:[%s5020_s7] sm:$0xff]  ;;  %vm5914_vm6 = vnez %v5889_v45 }
 0x4bb   : > { %v4722_v63 = vpop.f32.mrb[68].mxu1 }
 0x4bc   : > { %v3214_v21 = vpop.f32.mrb[69].mxu1 }
 0x4bd   : > { %v3261_v46 = vsel %vm5335_vm7, %v3214_v21, 0.0  ;;  %vm5915_vm7 = vnez %v5891_v54 }
 0x4bf   : > { %v4725_v47 = vpop.f32.mrb[70].mxu1 }
 0x4c0   : > { %v3224_v53 = vpop.f32.mrb[71].mxu1 }
 0x4c1   : > { %v3263_v4 = vsel %vm5346_vm8, %v3224_v53, 0.0  ;;  %vm5916_vm8 = vnez %v5893_v24 }
 0x4c3   : > { %v4728_v26 = vpop.f32.mrb[72].mxu1 }
 0x4c4   : > { %v3234_v23 = vpop.f32.mrb[73].mxu1 }
 0x4c5   : > { %v3265_v41 = vsel %vm5358_vm9, %v3234_v23, 0.0  ;;  %vm5917_vm9 = vnez %v5895_v40 }
 0x4c7   : > { %v4731_v39 = vpop.f32.mrb[74].mxu1 }
 0x4c8   : > { %v3244_v29 = vpop.f32.mrb[75].mxu1 }
 0x4c9   : > { %v3267_v49 = vsel %vm5371_vm10, %v3244_v29, 0.0 }
 0x4cb   : > { %v4736_v32 = vpop.f32.mrb[76].mxu1 }
 0x4cc   : > { %v3484_v30 = vadd.f32 %v4736_v32, %v4710_v20  ;;  %v3404_v37 = vpop.f32.mrb[77].mxu1  ;;  %v3772_v32 = vld [vmem:[%s5020_s7 + $0x18] sm:$0xff] }
 0x4cd   : > { %v3483_v6 = vadd.f32 %v3404_v37, %v3253_v28  ;;  %v3771_v28 = vld [vmem:[%s5020_s7 + $0x10] sm:$0xff] }
 0x4cf   : > { %v4739_v9 = vpop.f32.mrb[78].mxu1 }
 0x4d0   : > { %v3486_v34 = vadd.f32 %v4739_v9, %v4713_v13  ;;  %v3414_v35 = vpop.f32.mrb[79].mxu1 }
 0x4d1   : > { %v3485_v51 = vadd.f32 %v3414_v35, %v3255_v3 }
 0x4d3   : > { %v4742_v2 = vpop.f32.mrb[80].mxu1 }
 0x4d4   : > { %v3488_v57 = vadd.f32 %v4742_v2, %v4716_v22  ;;  %v3424_v7 = vpop.f32.mrb[81].mxu1 }
 0x4d5   : > { %v3487_v42 = vadd.f32 %v3424_v7, %v3257_v38  ;;  %v3774_v7 = vld [vmem:[%s5020_s7 + $0x28] sm:$0xff] }
 0x4d7   : > { %v4745_v43 = vpop.f32.mrb[82].mxu1 }
 0x4d8   : > { %v5712_v31 = vadd.f32 %v4745_v43, %v4719_v15  ;;  %v3434_v36 = vpop.f32.mrb[83].mxu1  ;;  %v3770_v15 = vld [vmem:[%s5020_s7 + $0x8] sm:$0xff]  ;;  %v3773_v43 = vld [vmem:[%s5020_s7 + $0x20] sm:$0xff] }
 0x4d9   : > { %v5714_v8 = vadd.f32 %v3434_v36, %v3259_v10 }
 0x4db   : > { %v4748_v18 = vpop.f32.mrb[84].mxu1 }
 0x4dc   : > { %v5718_v48 = vadd.f32 %v4748_v18, %v4722_v63  ;;  %v3444_v25 = vpop.f32.mrb[85].mxu1 }
 0x4dd   : > { %v5720_v50 = vadd.f32 %v3444_v25, %v3261_v46 }
 0x4df   : > { %v4751_v52 = vpop.f32.mrb[86].mxu1 }
 0x4e0   : > { %v5724_v33 = vadd.f32 %v4751_v52, %v4725_v47  ;;  %v3454_v12 = vpop.f32.mrb[87].mxu1 }
 0x4e1   : > { %v5726_v56 = vadd.f32 %v3454_v12, %v3263_v4 }
 0x4e3   : > { %v4754_v17 = vpop.f32.mrb[88].mxu1 }
 0x4e4   : > { %v5730_v58 = vadd.f32 %v4754_v17, %v4728_v26  ;;  %v3464_v60 = vpop.f32.mrb[89].mxu1  ;;  %v3776_v17 = vld [vmem:[%s5020_s7 + $0x38] sm:$0xff] }
 0x4e5   : > { %v5732_v1 = vadd.f32 %v3464_v60, %v3265_v41  ;;  %v3775_v41 = vld [vmem:[%s5020_s7 + $0x30] sm:$0xff] }
 0x4e7   : > { %v4757_v44 = vpop.f32.mrb[90].mxu1 }
 0x4e8   : > { %v5736_v16 = vadd.f32 %v4757_v44, %v4731_v39  ;;  %v3474_v20 = vpop.f32.mrb[91].mxu1 }
 0x4e9   : > { %v5738_v61 = vadd.f32 %v3474_v20, %v3267_v49 }
 0x4eb   : > { %v4762_v13 = vpop.f32.mrb[92].mxu1 }
 0x4ec   : > { %v3714_v59 = vsel %vm5401_vm13, %v4762_v13, 0.0  ;;  %v3634_v22 = vpop.f32.mrb[93].mxu1 }
 0x4ed   : > { %v3730_v14 = vadd.f32 %v3714_v59, %v3484_v30  ;;  %v3729_v62 = vadd.f32 %v3634_v22, %v3483_v6 }
 0x4ef   : > { %v3754_v63 = vadd.f32 %v5745_v0, %v3730_v14  ;;  %v3753_v21 = vadd.f32 %v5745_v0, %v3729_v62  ;;  %v4765_v47 = vpop.f32.mrb[94].mxu1  ;;  %v3778_v62 = vld [vmem:[%s5020_s7 + $0x48] sm:$0xff] }
 0x4f0   : > { %v3716_v5 = vsel %vm5911_vm3, %v4765_v47, 0.0  ;;  %v3644_v53 = vpop.f32.mrb[95].mxu1 }
 0x4f1   : > { %v3786_v26 = vadd.f32 %v3770_v15, %v3754_v63  ;;  %v3785_v23 = vadd.f32 %v3769_v19, %v3753_v21  ;;  %v3732_v39 = vadd.f32 %v3716_v5, %v3486_v34  ;;  %v3731_v29 = vadd.f32 %v3644_v53, %v3485_v51  ;;  %v3777_v15 = vld [vmem:[%s5020_s7 + $0x40] sm:$0xff] }
 0x4f3   : > { %v3802_v30 = vmax.f32 %v3786_v26, 0.0  ;;  %v3801_v37 = vmax.f32 %v3785_v23, 0.0  ;;  %v3756_v6 = vadd.f32 %v5745_v0, %v3732_v39  ;;  %v3755_v9 = vadd.f32 %v5745_v0, %v3731_v29  ;;  %v4768_v3 = vpop.f32.mrb[96].mxu1  ;;  %v3780_v39 = vld [vmem:[%s5020_s7 + $0x58] sm:$0xff]  ;;  %v3779_v29 = vld [vmem:[%s5020_s7 + $0x50] sm:$0xff] }
 0x4f4   : > { %v3718_v55 = vsel %vm5912_vm4, %v4768_v3, 0.0  ;;  %v3654_v35 = vpop.f32.mrb[97].mxu1 }
 0x4f5   : > { %3818 = vst.msk [vmem:[%s5025_s10 + $0x8] sm:$0xff] %vm279_vm1, %v3802_v30  ;;  %3817 = vst.msk [vmem:[%s5025_s10] sm:$0xff] %vm279_vm1, %v3801_v37  ;;  %v3788_v34 = vadd.f32 %v3772_v32, %v3756_v6  ;;  %v3787_v51 = vadd.f32 %v3771_v28, %v3755_v9  ;;  %v3734_v2 = vadd.f32 %v3718_v55, %v3488_v57 }
 0x4f6   : > { %v3733_v38 = vadd.f32 %v3654_v35, %v3487_v42  ;;  %v3782_v35 = vld [vmem:[%s5020_s7 + $0x68] sm:$0xff] }
 0x4f7   : > { %v3804_v10 = vmax.f32 %v3788_v34, 0.0  ;;  %v3803_v36 = vmax.f32 %v3787_v51, 0.0  ;;  %v3758_v11 = vadd.f32 %v5745_v0, %v3734_v2  ;;  %v4771_v46 = vpop.f32.mrb[98].mxu1  ;;  %v3781_v34 = vld [vmem:[%s5020_s7 + $0x60] sm:$0xff] }
 0x4f8   : > { %v3757_v18 = vadd.f32 %v5745_v0, %v3733_v38  ;;  %v3720_v25 = vsel %vm5913_vm5, %v4771_v46, 0.0  ;;  %v3664_v52 = vpop.f32.mrb[99].mxu1  ;;  %v3783_v46 = vld [vmem:[%s5020_s7 + $0x70] sm:$0xff] }
 0x4f9   : > { %3820 = vst.msk [vmem:[%s5025_s10 + $0x18] sm:$0xff] %vm279_vm1, %v3804_v10  ;;  %3819 = vst.msk [vmem:[%s5025_s10 + $0x10] sm:$0xff] %vm279_vm1, %v3803_v36  ;;  %v3790_v57 = vadd.f32 %v3774_v7, %v3758_v11  ;;  %v3736_v4 = vadd.f32 %v3720_v25, %v5712_v31  ;;  %v3735_v12 = vadd.f32 %v3664_v52, %v5714_v8 }
 0x4fa   : > { %v3789_v42 = vadd.f32 %v3773_v43, %v3757_v18  ;;  %v3784_v18 = vld [vmem:[%s5020_s7 + $0x78] sm:$0xff] }
 0x4fb   : > { %v3806_v60 = vmax.f32 %v3790_v57, 0.0  ;;  %v3760_v44 = vadd.f32 %v5745_v0, %v3736_v4  ;;  %v3759_v49 = vadd.f32 %v5745_v0, %v3735_v12  ;;  %v4774_v20 = vpop.f32.mrb[100].mxu1 }
 0x4fc   : > { %v3805_v27 = vmax.f32 %v3789_v42, 0.0  ;;  %v3722_v13 = vsel %vm5914_vm6, %v4774_v20, 0.0  ;;  %v3674_v59 = vpop.f32.mrb[101].mxu1 }
 0x4fd   : > { %3822 = vst.msk [vmem:[%s5025_s10 + $0x28] sm:$0xff] %vm279_vm1, %v3806_v60  ;;  %v3792_v31 = vadd.f32 %v3776_v17, %v3760_v44  ;;  %v3791_v8 = vadd.f32 %v3775_v41, %v3759_v49  ;;  %v3738_v22 = vadd.f32 %v3722_v13, %v5718_v48  ;;  %v3737_v14 = vadd.f32 %v3674_v59, %v5720_v50 }
 0x4fe   : > { %3821 = vst.msk [vmem:[%s5025_s10 + $0x20] sm:$0xff] %vm279_vm1, %v3805_v27 }
 0x4ff   : > { %v3808_v19 = vmax.f32 %v3792_v31, 0.0  ;;  %v3807_v45 = vmax.f32 %v3791_v8, 0.0  ;;  %v3762_v63 = vadd.f32 %v5745_v0, %v3738_v22  ;;  %v3761_v21 = vadd.f32 %v5745_v0, %v3737_v14  ;;  %v4777_v47 = vpop.f32.mrb[102].mxu1 }
 0x500   : > { %v3724_v5 = vsel %vm5915_vm7, %v4777_v47, 0.0  ;;  %v3684_v53 = vpop.f32.mrb[103].mxu1 }
 0x501   : > { %3824 = vst.msk [vmem:[%s5025_s10 + $0x38] sm:$0xff] %vm279_vm1, %v3808_v19  ;;  %3823 = vst.msk [vmem:[%s5025_s10 + $0x30] sm:$0xff] %vm279_vm1, %v3807_v45  ;;  %v3794_v48 = vadd.f32 %v3778_v62, %v3762_v63  ;;  %v3793_v50 = vadd.f32 %v3777_v15, %v3761_v21  ;;  %v3740_v26 = vadd.f32 %v3724_v5, %v5724_v33 }
 0x502   : > { %v3739_v23 = vadd.f32 %v3684_v53, %v5726_v56 }
 0x503   : > { %v3810_v32 = vmax.f32 %v3794_v48, 0.0  ;;  %v3809_v54 = vmax.f32 %v3793_v50, 0.0  ;;  %v3764_v28 = vadd.f32 %v5745_v0, %v3740_v26  ;;  %v4780_v37 = vpop.f32.mrb[104].mxu1 }
 0x504   : > { %v3763_v30 = vadd.f32 %v5745_v0, %v3739_v23  ;;  %v3726_v6 = vsel %vm5916_vm8, %v4780_v37, 0.0  ;;  %v3694_v9 = vpop.f32.mrb[105].mxu1 }
 0x505   : > { %3826 = vst.msk [vmem:[%s5025_s10 + $0x48] sm:$0xff] %vm279_vm1, %v3810_v32  ;;  %3825 = vst.msk [vmem:[%s5025_s10 + $0x40] sm:$0xff] %vm279_vm1, %v3809_v54  ;;  %v3796_v33 = vadd.f32 %v3780_v39, %v3764_v28  ;;  %v3742_v3 = vadd.f32 %v3726_v6, %v5730_v58  ;;  %v3741_v55 = vadd.f32 %v3694_v9, %v5732_v1 }
 0x506   : > { %v3795_v56 = vadd.f32 %v3779_v29, %v3763_v30 }
 0x507   : > { %v3812_v51 = vmax.f32 %v3796_v33, 0.0  ;;  %v3766_v2 = vadd.f32 %v5745_v0, %v3742_v3  ;;  %v3765_v38 = vadd.f32 %v5745_v0, %v3741_v55  ;;  %v4783_v7 = vpop.f32.mrb[106].mxu1 }
 0x508   : > { %v3811_v24 = vmax.f32 %v3795_v56, 0.0  ;;  %v3728_v43 = vsel %vm5917_vm9, %v4783_v7, 0.0  ;;  %v3704_v10 = vpop.f32.mrb[107].mxu1 }
 0x509   : > { %3828 = vst.msk [vmem:[%s5025_s10 + $0x58] sm:$0xff] %vm279_vm1, %v3812_v51  ;;  %v3798_v58 = vadd.f32 %v3782_v35, %v3766_v2  ;;  %v3797_v1 = vadd.f32 %v3781_v34, %v3765_v38  ;;  %v3744_v36 = vadd.f32 %v3728_v43, %v5736_v16  ;;  %v3743_v11 = vadd.f32 %v3704_v10, %v5738_v61 }
 0x50a   : > { %3827 = vst.msk [vmem:[%s5025_s10 + $0x50] sm:$0xff] %vm279_vm1, %v3811_v24 }
 0x50b   : > { %v3814_v25 = vmax.f32 %v3798_v58, 0.0  ;;  %v3813_v52 = vmax.f32 %v3797_v1, 0.0  ;;  %v3768_v40 = vadd.f32 %v5745_v0, %v3744_v36  ;;  %v3767_v57 = vadd.f32 %v5745_v0, %v3743_v11 }
 0x50d   : > { %3830 = vst.msk [vmem:[%s5025_s10 + $0x68] sm:$0xff] %vm279_vm1, %v3814_v25  ;;  %3829 = vst.msk [vmem:[%s5025_s10 + $0x60] sm:$0xff] %vm279_vm1, %v3813_v52  ;;  %v3800_v42 = vadd.f32 %v3784_v18, %v3768_v40  ;;  %v3799_v4 = vadd.f32 %v3783_v46, %v3767_v57 }
 0x50f   : > { %v3816_v12 = vmax.f32 %v3800_v42, 0.0  ;;  %v3815_v17 = vmax.f32 %v3799_v4, 0.0 }
 0x511   : > { %3832 = vst.msk [vmem:[%s5025_s10 + $0x78] sm:$0xff] %vm279_vm1, %v3816_v12  ;;  %3831 = vst.msk [vmem:[%s5025_s10 + $0x70] sm:$0xff] %vm279_vm1, %v3815_v17 }
 0x512 PF: > { %s14_s19 = sadd.s32 1, %s4937_s19   ;;  %s5918_s15 = smov %s4929_s17 }
 0x513   : > { %p11_p10 = scmp.ge.s32.totalorder %s14_s19, 6   ;;  %s5919_s16 = smov %s4933_s18 }
 0x514   : > { %s5920_s17 = smov %s5923_s20  ;;  %s5921_s18 = smov %s5927_s21 }
 0x515   :  { %13 = sbr.rel (!%p11_p10) target bundleno = 3 (0x3), region = 91 }

</bundles_post_ra>
